<compile_context>
chip_gen: v6e
topology: v6e:2x2x1
jax: 0.10.0
libtpu: 0.0.40
codegen_flags: <defaults>
</compile_context>

<pallas_src>
import jax
import jax.numpy as jnp
from jax import lax
from jax.experimental import pallas as pl
from jax.experimental.pallas import tpu as pltpu

# ----------------------------- small ViT config -----------------------------
B, C, H, W = 2, 3, 16, 16          # batch, channels, image size
P = 8                              # patch size
NP = (H // P) * (W // P)           # 4 patches per image
S = NP + 1                         # 5 real tokens (CLS + patches)
SP = 8                             # padded token rows (multiple of 8 sublanes)
D = 32                             # hidden size
NH = 4                             # attention heads
DH = D // NH                       # head dim = 8
MLP = 64                           # intermediate size
LAYERS = 2                         # encoder layers
CPP = C * P * P                    # flattened patch length = 192
LN_EPS = 1e-12                     # HF ViT layer_norm_eps
LEAKY_SLOPE = 0.2
ATTN_SCALE = 1.0 / (DH ** 0.5)


# ------------------------------ fused kernel ---------------------------------
def _layernorm(x, g, b):
    mu = jnp.mean(x, axis=-1, keepdims=True)
    var = jnp.mean(jnp.square(x - mu), axis=-1, keepdims=True)
    return (x - mu) * lax.rsqrt(var + LN_EPS) * g + b


def _vit_fused_kernel(patches_ref, pw_ref, misc_ref, wqkv3_ref, bqkv3_ref,
                      wo3_ref, w12_ref, vec_ref, out_ref):
    f32 = jnp.float32

    # ---- patch embedding straight into the padded (SP, D) token block ----
    # patches rows 0 (CLS slot) and NP+1..SP-1 (pad) are zero, so they embed
    # to zero; the template already carries cls + pos + patch bias.
    pe = jnp.dot(patches_ref[...], pw_ref[...], preferred_element_type=f32)
    h = misc_ref[0:SP, :] + pe                                   # (SP, D)

    lnf_g = misc_ref[8:9, :]
    lnf_b = misc_ref[9:10, :]
    kbias = misc_ref[10:11, 0:SP]    # (1, SP): 0 for real keys, -1e30 for pad

    for l in range(LAYERS):          # static, unrolled (2 layers)
        vl = vec_ref[l]                                          # (8, 128)
        ln1_g = vl[0:1, 0:D]
        ln1_b = vl[1:2, 0:D]
        bo    = vl[2:3, 0:D]
        ln2_g = vl[3:4, 0:D]
        ln2_b = vl[4:5, 0:D]
        b1    = vl[5:6, 0:MLP]
        b2    = vl[6:7, 0:D]

        # --- self-attention (pre-LN), all heads batched on a leading dim ---
        n1 = _layernorm(h, ln1_g, ln1_b)                         # (SP, D)
        n1_b = jnp.broadcast_to(n1, (NH, SP, D))
        qkv = lax.dot_general(                                   # (NH, SP, 3*DH)
            n1_b, wqkv3_ref[l], (((2,), (1,)), ((0,), (0,))),
            preferred_element_type=f32) + bqkv3_ref[l]
        q = qkv[:, :, 0:DH]          # scale already folded into Wq at init
        k = qkv[:, :, DH:2 * DH]
        v = qkv[:, :, 2 * DH:3 * DH]

        s = lax.dot_general(q, k, (((2,), (2,)), ((0,), (0,))),
                            preferred_element_type=f32)          # (NH, SP, SP)
        s = s + kbias                                            # mask padded keys
        m = jnp.max(s, axis=-1, keepdims=True)
        e = jnp.exp(s - m)
        p = e * pl.reciprocal(jnp.sum(e, axis=-1, keepdims=True), approx=True)

        o = lax.dot_general(p, v, (((2,), (1,)), ((0,), (0,))),
                            preferred_element_type=f32)          # (NH, SP, DH)
        # Head merge folded into the output projection: sum_h (o_h @ Wo_h).
        attn = lax.dot_general(o, wo3_ref[l], (((2,), (1,)), ((0,), (0,))),
                               preferred_element_type=f32)       # (NH, SP, D)
        h = h + jnp.sum(attn, axis=0) + bo

        # --- MLP block (pre-LN), fused [W1 | W2^T] weight slab ---
        n2 = _layernorm(h, ln2_g, ln2_b)
        w12_l = w12_ref[l]                                       # (D, 2*MLP)
        # TODO(synk): HF ViT uses exact (erf) GELU; tanh approximation used here.
        inter = jax.nn.gelu(
            jnp.dot(n2, w12_l[:, 0:MLP], preferred_element_type=f32) + b1,
            approximate=True)
        mlp = lax.dot_general(inter, w12_l[:, MLP:2 * MLP],
                              (((1,), (1,)), ((), ())),
                              preferred_element_type=f32)        # (SP, D)
        h = h + mlp + b2

    # ---- CLS select BEFORE final LN, then final LN + LeakyReLU(0.2) ----
    cls_row = h[0:1, :]
    feat = _layernorm(cls_row, lnf_g, lnf_b)
    out_ref[...] = jnp.where(feat >= 0.0, feat, LEAKY_SLOPE * feat)


# ------------------------------ parameter init -------------------------------
def init_params(key):
    # TODO(synk): pretrained vit-base-patch16-224-in21k weights are replaced by
    # deterministic random init (no checkpoint loading in this synthetic kernel).
    def normal(k, shape, std=0.02):
        return std * jax.random.normal(k, shape, dtype=jnp.float32)

    keys = iter(jax.random.split(key, 3 + 6 * LAYERS))

    patch_w = normal(next(keys), (CPP, D))
    patch_b = jnp.zeros((D,), jnp.float32)
    cls = normal(next(keys), (1, D))
    pos = normal(next(keys), (S, D))
    lnf_g = jnp.ones((D,), jnp.float32)
    lnf_b = jnp.zeros((D,), jnp.float32)

    # Token template (SP, D): row 0 = cls + pos[0]; rows 1..NP = pos + patch_b;
    # rows NP+1..SP-1 = zero padding.
    tmpl = jnp.zeros((SP, D), jnp.float32)
    tmpl = tmpl.at[0].set(cls[0] + pos[0])
    tmpl = tmpl.at[1:1 + NP].set(pos[1:] + patch_b[None, :])

    # Additive key-column bias masking the padded token rows in softmax.
    kbias = jnp.where(jnp.arange(SP) < S, 0.0, -1e30).astype(jnp.float32)

    misc = jnp.zeros((16, D), jnp.float32)
    misc = misc.at[0:SP].set(tmpl)
    misc = misc.at[8].set(lnf_g)
    misc = misc.at[9].set(lnf_b)
    misc = misc.at[10, 0:SP].set(kbias)

    def to_heads(w):                 # (D, D) -> (NH, D, DH), head h = cols h*DH:(h+1)*DH
        return w.reshape(D, NH, DH).transpose(1, 0, 2)

    def bias_heads(b):               # (D,) -> (NH, 1, DH)
        return b.reshape(NH, 1, DH)

    wqkv3, bqkv3, wo3, w12, vec = [], [], [], [], []
    for _ in range(LAYERS):
        ln1_g = jnp.ones((D,), jnp.float32)
        ln1_b = jnp.zeros((D,), jnp.float32)
        # Attention scale folded into the Q projection (bq is zero, so it needs
        # no scaling; a nonzero bq would be scaled identically).
        wq = normal(next(keys), (D, D)) * ATTN_SCALE
        wk = normal(next(keys), (D, D))
        wv = normal(next(keys), (D, D))
        bq = jnp.zeros((D,), jnp.float32)
        bk = jnp.zeros((D,), jnp.float32)
        bv = jnp.zeros((D,), jnp.float32)
        wo = normal(next(keys), (D, D))
        bo = jnp.zeros((D,), jnp.float32)
        ln2_g = jnp.ones((D,), jnp.float32)
        ln2_b = jnp.zeros((D,), jnp.float32)
        w1 = normal(next(keys), (D, MLP))
        b1 = jnp.zeros((MLP,), jnp.float32)
        w2 = normal(next(keys), (MLP, D))
        b2 = jnp.zeros((D,), jnp.float32)

        wqkv3.append(jnp.concatenate(
            [to_heads(wq), to_heads(wk), to_heads(wv)], axis=-1))   # (NH, D, 3*DH)
        bqkv3.append(jnp.concatenate(
            [bias_heads(bq), bias_heads(bk), bias_heads(bv)], axis=-1))  # (NH,1,3*DH)
        wo3.append(wo.reshape(NH, DH, D))                           # (NH, DH, D)
        w12.append(jnp.concatenate([w1, w2.T], axis=1))             # (D, 2*MLP)

        vl = jnp.zeros((8, 128), jnp.float32)
        vl = vl.at[0, 0:D].set(ln1_g)
        vl = vl.at[1, 0:D].set(ln1_b)
        vl = vl.at[2, 0:D].set(bo)
        vl = vl.at[3, 0:D].set(ln2_g)
        vl = vl.at[4, 0:D].set(ln2_b)
        vl = vl.at[5, 0:MLP].set(b1)
        vl = vl.at[6, 0:D].set(b2)
        vec.append(vl)

    return {
        "patch_w": patch_w,                  # (CPP, D)
        "misc": misc,                        # (16, D)
        "wqkv3": jnp.stack(wqkv3),           # (L, NH, D, 3*DH)
        "bqkv3": jnp.stack(bqkv3),           # (L, NH, 1, 3*DH)
        "wo3": jnp.stack(wo3),               # (L, NH, DH, D)
        "w12": jnp.stack(w12),               # (L, D, 2*MLP)
        "vec": jnp.stack(vec),               # (L, 8, 128)
    }


# --------------------------------- forward -----------------------------------
@jax.jit
def vit_forward(params, imgs):
    # Patch extraction: conv2d(kernel=stride=P) == im2col (layout-only glue),
    # padded into the in-kernel token layout (row 0 = CLS slot, rows 1..NP =
    # patches, remaining rows = zero padding -> zero embeddings).
    x = imgs.reshape(B, C, H // P, P, W // P, P)
    x = x.transpose(0, 2, 4, 1, 3, 5).reshape(B, NP, CPP)
    patches = jnp.zeros((B, SP, CPP), jnp.float32).at[:, 1:1 + NP, :].set(x)

    out = pl.pallas_call(
        _vit_fused_kernel,
        out_shape=jax.ShapeDtypeStruct((B, 1, D), jnp.float32),
        grid=(B,),
        in_specs=[
            pl.BlockSpec((None, SP, CPP), lambda b: (b, 0, 0)),
            pl.BlockSpec((CPP, D), lambda b: (0, 0)),
            pl.BlockSpec((16, D), lambda b: (0, 0)),
            pl.BlockSpec((LAYERS, NH, D, 3 * DH), lambda b: (0, 0, 0, 0)),
            pl.BlockSpec((LAYERS, NH, 1, 3 * DH), lambda b: (0, 0, 0, 0)),
            pl.BlockSpec((LAYERS, NH, DH, D), lambda b: (0, 0, 0, 0)),
            pl.BlockSpec((LAYERS, D, 2 * MLP), lambda b: (0, 0, 0)),
            pl.BlockSpec((LAYERS, 8, 128), lambda b: (0, 0, 0)),
        ],
        out_specs=pl.BlockSpec((None, 1, D), lambda b: (b, 0, 0)),
        compiler_params=pltpu.CompilerParams(
            dimension_semantics=("parallel",)),
    )(patches, params["patch_w"], params["misc"], params["wqkv3"],
      params["bqkv3"], params["wo3"], params["w12"], params["vec"])
    return out.reshape(B, D)


# ----------------------------------- main ------------------------------------
if __name__ == "__main__":
    key = jax.random.PRNGKey(0)
    pkey, xkey = jax.random.split(key)
    params = init_params(pkey)
    imgs = jax.random.normal(xkey, (B, C, H, W), dtype=jnp.float32)

    out = vit_forward(params, imgs)
    jax.block_until_ready(out)
    assert out.shape == (B, D) and out.dtype == jnp.float32
    assert bool(jnp.all(jnp.isfinite(out)))
    print("KERNEL_OK")
</pallas_src>

<mosaic_0001>
module attributes {stable_mosaic.version = 11 : i64} {
  func.func @_vit_fused_kernel(%arg0: i32, %arg1: memref<1x8x192xf32, #tpu.memory_space<vmem>>, %arg2: memref<192x32xf32, #tpu.memory_space<vmem>>, %arg3: memref<16x32xf32, #tpu.memory_space<vmem>>, %arg4: memref<2x4x32x24xf32, #tpu.memory_space<vmem>>, %arg5: memref<2x4x1x24xf32, #tpu.memory_space<vmem>>, %arg6: memref<2x4x8x32xf32, #tpu.memory_space<vmem>>, %arg7: memref<2x32x128xf32, #tpu.memory_space<vmem>>, %arg8: memref<2x8x128xf32, #tpu.memory_space<vmem>>, %arg9: memref<1x1x32xf32, #tpu.memory_space<vmem>>) attributes {dimension_semantics = [#tpu.dimension_semantics<parallel>], iteration_bounds = array<i64: 2>, scalar_prefetch = 0 : i64, scratch_operands = 0 : i64, tpu.core_type = #tpu.core_type<tc>, window_params = [{transform_indices = @transform_0, window_bounds = array<i64: 1, 8, 192>}, {pipeline_mode = #tpu.pipeline_mode<synchronous>, transform_indices = @transform_1, window_bounds = array<i64: 192, 32>}, {pipeline_mode = #tpu.pipeline_mode<synchronous>, transform_indices = @transform_2, window_bounds = array<i64: 16, 32>}, {pipeline_mode = #tpu.pipeline_mode<synchronous>, transform_indices = @transform_3, window_bounds = array<i64: 2, 4, 32, 24>}, {pipeline_mode = #tpu.pipeline_mode<synchronous>, transform_indices = @transform_4, window_bounds = array<i64: 2, 4, 1, 24>}, {pipeline_mode = #tpu.pipeline_mode<synchronous>, transform_indices = @transform_5, window_bounds = array<i64: 2, 4, 8, 32>}, {pipeline_mode = #tpu.pipeline_mode<synchronous>, transform_indices = @transform_6, window_bounds = array<i64: 2, 32, 128>}, {pipeline_mode = #tpu.pipeline_mode<synchronous>, transform_indices = @transform_7, window_bounds = array<i64: 2, 8, 128>}, {transform_indices = @transform_8, window_bounds = array<i64: 1, 1, 32>}]} {
    %c0 = arith.constant 0 : index
    %c0_0 = arith.constant 0 : index
    %c0_1 = arith.constant 0 : index
    %0 = vector.load %arg1[%c0, %c0_0, %c0_1] : memref<1x8x192xf32, #tpu.memory_space<vmem>>, vector<1x8x192xf32>
    %1 = vector.shape_cast %0 : vector<1x8x192xf32> to vector<8x192xf32>
    %c0_2 = arith.constant 0 : index
    %c0_3 = arith.constant 0 : index
    %2 = vector.load %arg2[%c0_2, %c0_3] : memref<192x32xf32, #tpu.memory_space<vmem>>, vector<192x32xf32>
    %cst = arith.constant dense<0.000000e+00> : vector<8x32xf32>
    %3 = tpu.matmul %1, %2, %cst {dimension_numbers = #tpu.dot_dimension_numbers<[1], [0], [0], [1], [0, 0, 1, 1], [], []>} : vector<8x192xf32>, vector<192x32xf32>, vector<8x32xf32> -> vector<8x32xf32>
    %c0_4 = arith.constant 0 : index
    %c0_5 = arith.constant 0 : index
    %4 = vector.load %arg3[%c0_4, %c0_5] : memref<16x32xf32, #tpu.memory_space<vmem>>, vector<8x32xf32>
    %5 = arith.addf %4, %3 : vector<8x32xf32>
    %c8 = arith.constant 8 : index
    %c0_6 = arith.constant 0 : index
    %6 = vector.load %arg3[%c8, %c0_6] : memref<16x32xf32, #tpu.memory_space<vmem>>, vector<1x32xf32>
    %c9 = arith.constant 9 : index
    %c0_7 = arith.constant 0 : index
    %7 = vector.load %arg3[%c9, %c0_7] : memref<16x32xf32, #tpu.memory_space<vmem>>, vector<1x32xf32>
    %c10 = arith.constant 10 : index
    %c0_8 = arith.constant 0 : index
    %8 = vector.load %arg3[%c10, %c0_8] : memref<16x32xf32, #tpu.memory_space<vmem>>, vector<1x8xf32>
    %c0_9 = arith.constant 0 : index
    %c0_10 = arith.constant 0 : index
    %c0_11 = arith.constant 0 : index
    %9 = vector.load %arg8[%c0_9, %c0_10, %c0_11] : memref<2x8x128xf32, #tpu.memory_space<vmem>>, vector<1x8x128xf32>
    %10 = vector.shape_cast %9 : vector<1x8x128xf32> to vector<8x128xf32>
    %11 = vector.extract_strided_slice %10 {offsets = [0, 0], sizes = [1, 32], strides = [1, 1]} : vector<8x128xf32> to vector<1x32xf32>
    %12 = vector.extract_strided_slice %10 {offsets = [1, 0], sizes = [1, 32], strides = [1, 1]} : vector<8x128xf32> to vector<1x32xf32>
    %13 = vector.extract_strided_slice %10 {offsets = [2, 0], sizes = [1, 32], strides = [1, 1]} : vector<8x128xf32> to vector<1x32xf32>
    %14 = vector.extract_strided_slice %10 {offsets = [3, 0], sizes = [1, 32], strides = [1, 1]} : vector<8x128xf32> to vector<1x32xf32>
    %15 = vector.extract_strided_slice %10 {offsets = [4, 0], sizes = [1, 32], strides = [1, 1]} : vector<8x128xf32> to vector<1x32xf32>
    %16 = vector.extract_strided_slice %10 {offsets = [5, 0], sizes = [1, 64], strides = [1, 1]} : vector<8x128xf32> to vector<1x64xf32>
    %17 = vector.extract_strided_slice %10 {offsets = [6, 0], sizes = [1, 32], strides = [1, 1]} : vector<8x128xf32> to vector<1x32xf32>
    %cst_12 = arith.constant dense<0.000000e+00> : vector<8xf32>
    %18 = vector.multi_reduction <add>, %5, %cst_12 [1] : vector<8x32xf32> to vector<8xf32>
    %19 = vector.shape_cast %18 : vector<8xf32> to vector<8x1xf32>
    %cst_13 = arith.constant 3.200000e+01 : f32
    %20 = vector.broadcast %cst_13 : f32 to vector<8x1xf32>
    %21 = arith.divf %19, %20 : vector<8x1xf32>
    %22 = vector.broadcast %21 : vector<8x1xf32> to vector<8x32xf32>
    %23 = arith.subf %5, %22 : vector<8x32xf32>
    %24 = arith.mulf %23, %23 : vector<8x32xf32>
    %cst_14 = arith.constant dense<0.000000e+00> : vector<8xf32>
    %25 = vector.multi_reduction <add>, %24, %cst_14 [1] : vector<8x32xf32> to vector<8xf32>
    %26 = vector.shape_cast %25 : vector<8xf32> to vector<8x1xf32>
    %cst_15 = arith.constant 3.200000e+01 : f32
    %27 = vector.broadcast %cst_15 : f32 to vector<8x1xf32>
    %28 = arith.divf %26, %27 : vector<8x1xf32>
    %29 = vector.broadcast %21 : vector<8x1xf32> to vector<8x32xf32>
    %30 = arith.subf %5, %29 : vector<8x32xf32>
    %cst_16 = arith.constant 9.99999996E-13 : f32
    %31 = vector.broadcast %cst_16 : f32 to vector<8x1xf32>
    %32 = arith.addf %28, %31 : vector<8x1xf32>
    %33 = math.rsqrt %32 : vector<8x1xf32>
    %34 = vector.broadcast %33 : vector<8x1xf32> to vector<8x32xf32>
    %35 = arith.mulf %30, %34 : vector<8x32xf32>
    %36 = vector.broadcast %11 : vector<1x32xf32> to vector<8x32xf32>
    %37 = arith.mulf %35, %36 : vector<8x32xf32>
    %38 = vector.broadcast %12 : vector<1x32xf32> to vector<8x32xf32>
    %39 = arith.addf %37, %38 : vector<8x32xf32>
    %40 = vector.shape_cast %39 : vector<8x32xf32> to vector<1x8x32xf32>
    %41 = vector.broadcast %40 : vector<1x8x32xf32> to vector<4x8x32xf32>
    %c0_17 = arith.constant 0 : index
    %c0_18 = arith.constant 0 : index
    %c0_19 = arith.constant 0 : index
    %c0_20 = arith.constant 0 : index
    %42 = vector.load %arg4[%c0_17, %c0_18, %c0_19, %c0_20] : memref<2x4x32x24xf32, #tpu.memory_space<vmem>>, vector<1x4x32x24xf32>
    %43 = vector.shape_cast %42 : vector<1x4x32x24xf32> to vector<4x32x24xf32>
    %cst_21 = arith.constant dense<0.000000e+00> : vector<4x8x24xf32>
    %44 = tpu.matmul %41, %43, %cst_21 {dimension_numbers = #tpu.dot_dimension_numbers<[2], [1], [1], [2], [0, 0, 0, 1, 1, 2], [0], [0]>} : vector<4x8x32xf32>, vector<4x32x24xf32>, vector<4x8x24xf32> -> vector<4x8x24xf32>
    %c0_22 = arith.constant 0 : index
    %c0_23 = arith.constant 0 : index
    %c0_24 = arith.constant 0 : index
    %c0_25 = arith.constant 0 : index
    %45 = vector.load %arg5[%c0_22, %c0_23, %c0_24, %c0_25] : memref<2x4x1x24xf32, #tpu.memory_space<vmem>>, vector<1x4x1x24xf32>
    %46 = vector.shape_cast %45 : vector<1x4x1x24xf32> to vector<4x1x24xf32>
    %47 = vector.broadcast %46 : vector<4x1x24xf32> to vector<4x8x24xf32>
    %48 = arith.addf %44, %47 : vector<4x8x24xf32>
    %49 = vector.extract_strided_slice %48 {offsets = [0, 0, 0], sizes = [4, 8, 8], strides = [1, 1, 1]} : vector<4x8x24xf32> to vector<4x8x8xf32>
    %50 = vector.extract_strided_slice %48 {offsets = [0, 0, 8], sizes = [4, 8, 8], strides = [1, 1, 1]} : vector<4x8x24xf32> to vector<4x8x8xf32>
    %51 = vector.extract_strided_slice %48 {offsets = [0, 0, 16], sizes = [4, 8, 8], strides = [1, 1, 1]} : vector<4x8x24xf32> to vector<4x8x8xf32>
    %cst_26 = arith.constant dense<0.000000e+00> : vector<4x8x8xf32>
    %52 = tpu.matmul %49, %50, %cst_26 {dimension_numbers = #tpu.dot_dimension_numbers<[2], [2], [1], [1], [0, 0, 0, 1, 1, 1], [0], [0]>} : vector<4x8x8xf32>, vector<4x8x8xf32>, vector<4x8x8xf32> -> vector<4x8x8xf32>
    %53 = vector.shape_cast %8 : vector<1x8xf32> to vector<1x1x8xf32>
    %54 = vector.broadcast %53 : vector<1x1x8xf32> to vector<4x8x8xf32>
    %55 = arith.addf %52, %54 : vector<4x8x8xf32>
    %cst_27 = arith.constant dense<0xFF800000> : vector<4x8xf32>
    %56 = vector.multi_reduction <maximumf>, %55, %cst_27 [2] : vector<4x8x8xf32> to vector<4x8xf32>
    %57 = vector.shape_cast %56 : vector<4x8xf32> to vector<4x8x1xf32>
    %58 = vector.broadcast %57 : vector<4x8x1xf32> to vector<4x8x8xf32>
    %59 = arith.subf %55, %58 : vector<4x8x8xf32>
    %60 = math.exp %59 : vector<4x8x8xf32>
    %cst_28 = arith.constant dense<0.000000e+00> : vector<4x8xf32>
    %61 = vector.multi_reduction <add>, %60, %cst_28 [2] : vector<4x8x8xf32> to vector<4x8xf32>
    %62 = vector.shape_cast %61 : vector<4x8xf32> to vector<4x8x1xf32>
    %63 = tpu.reciprocal %62 {approx = true} : vector<4x8x1xf32> -> vector<4x8x1xf32>
    %64 = vector.broadcast %63 : vector<4x8x1xf32> to vector<4x8x8xf32>
    %65 = arith.mulf %60, %64 : vector<4x8x8xf32>
    %cst_29 = arith.constant dense<0.000000e+00> : vector<4x8x8xf32>
    %66 = tpu.matmul %65, %51, %cst_29 {dimension_numbers = #tpu.dot_dimension_numbers<[2], [1], [1], [2], [0, 0, 0, 1, 1, 2], [0], [0]>} : vector<4x8x8xf32>, vector<4x8x8xf32>, vector<4x8x8xf32> -> vector<4x8x8xf32>
    %c0_30 = arith.constant 0 : index
    %c0_31 = arith.constant 0 : index
    %c0_32 = arith.constant 0 : index
    %c0_33 = arith.constant 0 : index
    %67 = vector.load %arg6[%c0_30, %c0_31, %c0_32, %c0_33] : memref<2x4x8x32xf32, #tpu.memory_space<vmem>>, vector<1x4x8x32xf32>
    %68 = vector.shape_cast %67 : vector<1x4x8x32xf32> to vector<4x8x32xf32>
    %cst_34 = arith.constant dense<0.000000e+00> : vector<4x8x32xf32>
    %69 = tpu.matmul %66, %68, %cst_34 {dimension_numbers = #tpu.dot_dimension_numbers<[2], [1], [1], [2], [0, 0, 0, 1, 1, 2], [0], [0]>} : vector<4x8x8xf32>, vector<4x8x32xf32>, vector<4x8x32xf32> -> vector<4x8x32xf32>
    %cst_35 = arith.constant dense<0.000000e+00> : vector<8x32xf32>
    %70 = vector.multi_reduction <add>, %69, %cst_35 [0] : vector<4x8x32xf32> to vector<8x32xf32>
    %71 = arith.addf %5, %70 : vector<8x32xf32>
    %72 = vector.broadcast %13 : vector<1x32xf32> to vector<8x32xf32>
    %73 = arith.addf %71, %72 : vector<8x32xf32>
    %cst_36 = arith.constant dense<0.000000e+00> : vector<8xf32>
    %74 = vector.multi_reduction <add>, %73, %cst_36 [1] : vector<8x32xf32> to vector<8xf32>
    %75 = vector.shape_cast %74 : vector<8xf32> to vector<8x1xf32>
    %cst_37 = arith.constant 3.200000e+01 : f32
    %76 = vector.broadcast %cst_37 : f32 to vector<8x1xf32>
    %77 = arith.divf %75, %76 : vector<8x1xf32>
    %78 = vector.broadcast %77 : vector<8x1xf32> to vector<8x32xf32>
    %79 = arith.subf %73, %78 : vector<8x32xf32>
    %80 = arith.mulf %79, %79 : vector<8x32xf32>
    %cst_38 = arith.constant dense<0.000000e+00> : vector<8xf32>
    %81 = vector.multi_reduction <add>, %80, %cst_38 [1] : vector<8x32xf32> to vector<8xf32>
    %82 = vector.shape_cast %81 : vector<8xf32> to vector<8x1xf32>
    %cst_39 = arith.constant 3.200000e+01 : f32
    %83 = vector.broadcast %cst_39 : f32 to vector<8x1xf32>
    %84 = arith.divf %82, %83 : vector<8x1xf32>
    %85 = vector.broadcast %77 : vector<8x1xf32> to vector<8x32xf32>
    %86 = arith.subf %73, %85 : vector<8x32xf32>
    %cst_40 = arith.constant 9.99999996E-13 : f32
    %87 = vector.broadcast %cst_40 : f32 to vector<8x1xf32>
    %88 = arith.addf %84, %87 : vector<8x1xf32>
    %89 = math.rsqrt %88 : vector<8x1xf32>
    %90 = vector.broadcast %89 : vector<8x1xf32> to vector<8x32xf32>
    %91 = arith.mulf %86, %90 : vector<8x32xf32>
    %92 = vector.broadcast %14 : vector<1x32xf32> to vector<8x32xf32>
    %93 = arith.mulf %91, %92 : vector<8x32xf32>
    %94 = vector.broadcast %15 : vector<1x32xf32> to vector<8x32xf32>
    %95 = arith.addf %93, %94 : vector<8x32xf32>
    %c0_41 = arith.constant 0 : index
    %c0_42 = arith.constant 0 : index
    %c0_43 = arith.constant 0 : index
    %96 = vector.load %arg7[%c0_41, %c0_42, %c0_43] : memref<2x32x128xf32, #tpu.memory_space<vmem>>, vector<1x32x128xf32>
    %97 = vector.shape_cast %96 : vector<1x32x128xf32> to vector<32x128xf32>
    %98 = vector.extract_strided_slice %97 {offsets = [0, 0], sizes = [32, 64], strides = [1, 1]} : vector<32x128xf32> to vector<32x64xf32>
    %cst_44 = arith.constant dense<0.000000e+00> : vector<8x64xf32>
    %99 = tpu.matmul %95, %98, %cst_44 {dimension_numbers = #tpu.dot_dimension_numbers<[1], [0], [0], [1], [0, 0, 1, 1], [], []>} : vector<8x32xf32>, vector<32x64xf32>, vector<8x64xf32> -> vector<8x64xf32>
    %100 = vector.broadcast %16 : vector<1x64xf32> to vector<8x64xf32>
    %101 = arith.addf %99, %100 : vector<8x64xf32>
    %102 = arith.mulf %101, %101 : vector<8x64xf32>
    %103 = arith.mulf %101, %102 : vector<8x64xf32>
    %cst_45 = arith.constant 4.471500e-02 : f32
    %104 = vector.broadcast %cst_45 : f32 to vector<8x64xf32>
    %105 = arith.mulf %104, %103 : vector<8x64xf32>
    %106 = arith.addf %101, %105 : vector<8x64xf32>
    %cst_46 = arith.constant 0.797884583 : f32
    %107 = vector.broadcast %cst_46 : f32 to vector<8x64xf32>
    %108 = arith.mulf %107, %106 : vector<8x64xf32>
    %109 = math.tanh %108 : vector<8x64xf32>
    %cst_47 = arith.constant 1.000000e+00 : f32
    %110 = vector.broadcast %cst_47 : f32 to vector<8x64xf32>
    %111 = arith.addf %110, %109 : vector<8x64xf32>
    %cst_48 = arith.constant 5.000000e-01 : f32
    %112 = vector.broadcast %cst_48 : f32 to vector<8x64xf32>
    %113 = arith.mulf %112, %111 : vector<8x64xf32>
    %114 = arith.mulf %101, %113 : vector<8x64xf32>
    %115 = vector.extract_strided_slice %97 {offsets = [0, 64], sizes = [32, 64], strides = [1, 1]} : vector<32x128xf32> to vector<32x64xf32>
    %cst_49 = arith.constant dense<0.000000e+00> : vector<8x32xf32>
    %116 = tpu.matmul %114, %115, %cst_49 {dimension_numbers = #tpu.dot_dimension_numbers<[1], [1], [0], [0], [0, 0, 1, 0], [], []>} : vector<8x64xf32>, vector<32x64xf32>, vector<8x32xf32> -> vector<8x32xf32>
    %117 = arith.addf %73, %116 : vector<8x32xf32>
    %118 = vector.broadcast %17 : vector<1x32xf32> to vector<8x32xf32>
    %119 = arith.addf %117, %118 : vector<8x32xf32>
    %c1 = arith.constant 1 : index
    %c0_50 = arith.constant 0 : index
    %c0_51 = arith.constant 0 : index
    %120 = vector.load %arg8[%c1, %c0_50, %c0_51] : memref<2x8x128xf32, #tpu.memory_space<vmem>>, vector<1x8x128xf32>
    %121 = vector.shape_cast %120 : vector<1x8x128xf32> to vector<8x128xf32>
    %122 = vector.extract_strided_slice %121 {offsets = [0, 0], sizes = [1, 32], strides = [1, 1]} : vector<8x128xf32> to vector<1x32xf32>
    %123 = vector.extract_strided_slice %121 {offsets = [1, 0], sizes = [1, 32], strides = [1, 1]} : vector<8x128xf32> to vector<1x32xf32>
    %124 = vector.extract_strided_slice %121 {offsets = [2, 0], sizes = [1, 32], strides = [1, 1]} : vector<8x128xf32> to vector<1x32xf32>
    %125 = vector.extract_strided_slice %121 {offsets = [3, 0], sizes = [1, 32], strides = [1, 1]} : vector<8x128xf32> to vector<1x32xf32>
    %126 = vector.extract_strided_slice %121 {offsets = [4, 0], sizes = [1, 32], strides = [1, 1]} : vector<8x128xf32> to vector<1x32xf32>
    %127 = vector.extract_strided_slice %121 {offsets = [5, 0], sizes = [1, 64], strides = [1, 1]} : vector<8x128xf32> to vector<1x64xf32>
    %128 = vector.extract_strided_slice %121 {offsets = [6, 0], sizes = [1, 32], strides = [1, 1]} : vector<8x128xf32> to vector<1x32xf32>
    %cst_52 = arith.constant dense<0.000000e+00> : vector<8xf32>
    %129 = vector.multi_reduction <add>, %119, %cst_52 [1] : vector<8x32xf32> to vector<8xf32>
    %130 = vector.shape_cast %129 : vector<8xf32> to vector<8x1xf32>
    %cst_53 = arith.constant 3.200000e+01 : f32
    %131 = vector.broadcast %cst_53 : f32 to vector<8x1xf32>
    %132 = arith.divf %130, %131 : vector<8x1xf32>
    %133 = vector.broadcast %132 : vector<8x1xf32> to vector<8x32xf32>
    %134 = arith.subf %119, %133 : vector<8x32xf32>
    %135 = arith.mulf %134, %134 : vector<8x32xf32>
    %cst_54 = arith.constant dense<0.000000e+00> : vector<8xf32>
    %136 = vector.multi_reduction <add>, %135, %cst_54 [1] : vector<8x32xf32> to vector<8xf32>
    %137 = vector.shape_cast %136 : vector<8xf32> to vector<8x1xf32>
    %cst_55 = arith.constant 3.200000e+01 : f32
    %138 = vector.broadcast %cst_55 : f32 to vector<8x1xf32>
    %139 = arith.divf %137, %138 : vector<8x1xf32>
    %140 = vector.broadcast %132 : vector<8x1xf32> to vector<8x32xf32>
    %141 = arith.subf %119, %140 : vector<8x32xf32>
    %cst_56 = arith.constant 9.99999996E-13 : f32
    %142 = vector.broadcast %cst_56 : f32 to vector<8x1xf32>
    %143 = arith.addf %139, %142 : vector<8x1xf32>
    %144 = math.rsqrt %143 : vector<8x1xf32>
    %145 = vector.broadcast %144 : vector<8x1xf32> to vector<8x32xf32>
    %146 = arith.mulf %141, %145 : vector<8x32xf32>
    %147 = vector.broadcast %122 : vector<1x32xf32> to vector<8x32xf32>
    %148 = arith.mulf %146, %147 : vector<8x32xf32>
    %149 = vector.broadcast %123 : vector<1x32xf32> to vector<8x32xf32>
    %150 = arith.addf %148, %149 : vector<8x32xf32>
    %151 = vector.shape_cast %150 : vector<8x32xf32> to vector<1x8x32xf32>
    %152 = vector.broadcast %151 : vector<1x8x32xf32> to vector<4x8x32xf32>
    %c1_57 = arith.constant 1 : index
    %c0_58 = arith.constant 0 : index
    %c0_59 = arith.constant 0 : index
    %c0_60 = arith.constant 0 : index
    %153 = vector.load %arg4[%c1_57, %c0_58, %c0_59, %c0_60] : memref<2x4x32x24xf32, #tpu.memory_space<vmem>>, vector<1x4x32x24xf32>
    %154 = vector.shape_cast %153 : vector<1x4x32x24xf32> to vector<4x32x24xf32>
    %cst_61 = arith.constant dense<0.000000e+00> : vector<4x8x24xf32>
    %155 = tpu.matmul %152, %154, %cst_61 {dimension_numbers = #tpu.dot_dimension_numbers<[2], [1], [1], [2], [0, 0, 0, 1, 1, 2], [0], [0]>} : vector<4x8x32xf32>, vector<4x32x24xf32>, vector<4x8x24xf32> -> vector<4x8x24xf32>
    %c1_62 = arith.constant 1 : index
    %c0_63 = arith.constant 0 : index
    %c0_64 = arith.constant 0 : index
    %c0_65 = arith.constant 0 : index
    %156 = vector.load %arg5[%c1_62, %c0_63, %c0_64, %c0_65] : memref<2x4x1x24xf32, #tpu.memory_space<vmem>>, vector<1x4x1x24xf32>
    %157 = vector.shape_cast %156 : vector<1x4x1x24xf32> to vector<4x1x24xf32>
    %158 = vector.broadcast %157 : vector<4x1x24xf32> to vector<4x8x24xf32>
    %159 = arith.addf %155, %158 : vector<4x8x24xf32>
    %160 = vector.extract_strided_slice %159 {offsets = [0, 0, 0], sizes = [4, 8, 8], strides = [1, 1, 1]} : vector<4x8x24xf32> to vector<4x8x8xf32>
    %161 = vector.extract_strided_slice %159 {offsets = [0, 0, 8], sizes = [4, 8, 8], strides = [1, 1, 1]} : vector<4x8x24xf32> to vector<4x8x8xf32>
    %162 = vector.extract_strided_slice %159 {offsets = [0, 0, 16], sizes = [4, 8, 8], strides = [1, 1, 1]} : vector<4x8x24xf32> to vector<4x8x8xf32>
    %cst_66 = arith.constant dense<0.000000e+00> : vector<4x8x8xf32>
    %163 = tpu.matmul %160, %161, %cst_66 {dimension_numbers = #tpu.dot_dimension_numbers<[2], [2], [1], [1], [0, 0, 0, 1, 1, 1], [0], [0]>} : vector<4x8x8xf32>, vector<4x8x8xf32>, vector<4x8x8xf32> -> vector<4x8x8xf32>
    %164 = vector.shape_cast %8 : vector<1x8xf32> to vector<1x1x8xf32>
    %165 = vector.broadcast %164 : vector<1x1x8xf32> to vector<4x8x8xf32>
    %166 = arith.addf %163, %165 : vector<4x8x8xf32>
    %cst_67 = arith.constant dense<0xFF800000> : vector<4x8xf32>
    %167 = vector.multi_reduction <maximumf>, %166, %cst_67 [2] : vector<4x8x8xf32> to vector<4x8xf32>
    %168 = vector.shape_cast %167 : vector<4x8xf32> to vector<4x8x1xf32>
    %169 = vector.broadcast %168 : vector<4x8x1xf32> to vector<4x8x8xf32>
    %170 = arith.subf %166, %169 : vector<4x8x8xf32>
    %171 = math.exp %170 : vector<4x8x8xf32>
    %cst_68 = arith.constant dense<0.000000e+00> : vector<4x8xf32>
    %172 = vector.multi_reduction <add>, %171, %cst_68 [2] : vector<4x8x8xf32> to vector<4x8xf32>
    %173 = vector.shape_cast %172 : vector<4x8xf32> to vector<4x8x1xf32>
    %174 = tpu.reciprocal %173 {approx = true} : vector<4x8x1xf32> -> vector<4x8x1xf32>
    %175 = vector.broadcast %174 : vector<4x8x1xf32> to vector<4x8x8xf32>
    %176 = arith.mulf %171, %175 : vector<4x8x8xf32>
    %cst_69 = arith.constant dense<0.000000e+00> : vector<4x8x8xf32>
    %177 = tpu.matmul %176, %162, %cst_69 {dimension_numbers = #tpu.dot_dimension_numbers<[2], [1], [1], [2], [0, 0, 0, 1, 1, 2], [0], [0]>} : vector<4x8x8xf32>, vector<4x8x8xf32>, vector<4x8x8xf32> -> vector<4x8x8xf32>
    %c1_70 = arith.constant 1 : index
    %c0_71 = arith.constant 0 : index
    %c0_72 = arith.constant 0 : index
    %c0_73 = arith.constant 0 : index
    %178 = vector.load %arg6[%c1_70, %c0_71, %c0_72, %c0_73] : memref<2x4x8x32xf32, #tpu.memory_space<vmem>>, vector<1x4x8x32xf32>
    %179 = vector.shape_cast %178 : vector<1x4x8x32xf32> to vector<4x8x32xf32>
    %cst_74 = arith.constant dense<0.000000e+00> : vector<4x8x32xf32>
    %180 = tpu.matmul %177, %179, %cst_74 {dimension_numbers = #tpu.dot_dimension_numbers<[2], [1], [1], [2], [0, 0, 0, 1, 1, 2], [0], [0]>} : vector<4x8x8xf32>, vector<4x8x32xf32>, vector<4x8x32xf32> -> vector<4x8x32xf32>
    %cst_75 = arith.constant dense<0.000000e+00> : vector<8x32xf32>
    %181 = vector.multi_reduction <add>, %180, %cst_75 [0] : vector<4x8x32xf32> to vector<8x32xf32>
    %182 = arith.addf %119, %181 : vector<8x32xf32>
    %183 = vector.broadcast %124 : vector<1x32xf32> to vector<8x32xf32>
    %184 = arith.addf %182, %183 : vector<8x32xf32>
    %cst_76 = arith.constant dense<0.000000e+00> : vector<8xf32>
    %185 = vector.multi_reduction <add>, %184, %cst_76 [1] : vector<8x32xf32> to vector<8xf32>
    %186 = vector.shape_cast %185 : vector<8xf32> to vector<8x1xf32>
    %cst_77 = arith.constant 3.200000e+01 : f32
    %187 = vector.broadcast %cst_77 : f32 to vector<8x1xf32>
    %188 = arith.divf %186, %187 : vector<8x1xf32>
    %189 = vector.broadcast %188 : vector<8x1xf32> to vector<8x32xf32>
    %190 = arith.subf %184, %189 : vector<8x32xf32>
    %191 = arith.mulf %190, %190 : vector<8x32xf32>
    %cst_78 = arith.constant dense<0.000000e+00> : vector<8xf32>
    %192 = vector.multi_reduction <add>, %191, %cst_78 [1] : vector<8x32xf32> to vector<8xf32>
    %193 = vector.shape_cast %192 : vector<8xf32> to vector<8x1xf32>
    %cst_79 = arith.constant 3.200000e+01 : f32
    %194 = vector.broadcast %cst_79 : f32 to vector<8x1xf32>
    %195 = arith.divf %193, %194 : vector<8x1xf32>
    %196 = vector.broadcast %188 : vector<8x1xf32> to vector<8x32xf32>
    %197 = arith.subf %184, %196 : vector<8x32xf32>
    %cst_80 = arith.constant 9.99999996E-13 : f32
    %198 = vector.broadcast %cst_80 : f32 to vector<8x1xf32>
    %199 = arith.addf %195, %198 : vector<8x1xf32>
    %200 = math.rsqrt %199 : vector<8x1xf32>
    %201 = vector.broadcast %200 : vector<8x1xf32> to vector<8x32xf32>
    %202 = arith.mulf %197, %201 : vector<8x32xf32>
    %203 = vector.broadcast %125 : vector<1x32xf32> to vector<8x32xf32>
    %204 = arith.mulf %202, %203 : vector<8x32xf32>
    %205 = vector.broadcast %126 : vector<1x32xf32> to vector<8x32xf32>
    %206 = arith.addf %204, %205 : vector<8x32xf32>
    %c1_81 = arith.constant 1 : index
    %c0_82 = arith.constant 0 : index
    %c0_83 = arith.constant 0 : index
    %207 = vector.load %arg7[%c1_81, %c0_82, %c0_83] : memref<2x32x128xf32, #tpu.memory_space<vmem>>, vector<1x32x128xf32>
    %208 = vector.shape_cast %207 : vector<1x32x128xf32> to vector<32x128xf32>
    %209 = vector.extract_strided_slice %208 {offsets = [0, 0], sizes = [32, 64], strides = [1, 1]} : vector<32x128xf32> to vector<32x64xf32>
    %cst_84 = arith.constant dense<0.000000e+00> : vector<8x64xf32>
    %210 = tpu.matmul %206, %209, %cst_84 {dimension_numbers = #tpu.dot_dimension_numbers<[1], [0], [0], [1], [0, 0, 1, 1], [], []>} : vector<8x32xf32>, vector<32x64xf32>, vector<8x64xf32> -> vector<8x64xf32>
    %211 = vector.broadcast %127 : vector<1x64xf32> to vector<8x64xf32>
    %212 = arith.addf %210, %211 : vector<8x64xf32>
    %213 = arith.mulf %212, %212 : vector<8x64xf32>
    %214 = arith.mulf %212, %213 : vector<8x64xf32>
    %cst_85 = arith.constant 4.471500e-02 : f32
    %215 = vector.broadcast %cst_85 : f32 to vector<8x64xf32>
    %216 = arith.mulf %215, %214 : vector<8x64xf32>
    %217 = arith.addf %212, %216 : vector<8x64xf32>
    %cst_86 = arith.constant 0.797884583 : f32
    %218 = vector.broadcast %cst_86 : f32 to vector<8x64xf32>
    %219 = arith.mulf %218, %217 : vector<8x64xf32>
    %220 = math.tanh %219 : vector<8x64xf32>
    %cst_87 = arith.constant 1.000000e+00 : f32
    %221 = vector.broadcast %cst_87 : f32 to vector<8x64xf32>
    %222 = arith.addf %221, %220 : vector<8x64xf32>
    %cst_88 = arith.constant 5.000000e-01 : f32
    %223 = vector.broadcast %cst_88 : f32 to vector<8x64xf32>
    %224 = arith.mulf %223, %222 : vector<8x64xf32>
    %225 = arith.mulf %212, %224 : vector<8x64xf32>
    %226 = vector.extract_strided_slice %208 {offsets = [0, 64], sizes = [32, 64], strides = [1, 1]} : vector<32x128xf32> to vector<32x64xf32>
    %cst_89 = arith.constant dense<0.000000e+00> : vector<8x32xf32>
    %227 = tpu.matmul %225, %226, %cst_89 {dimension_numbers = #tpu.dot_dimension_numbers<[1], [1], [0], [0], [0, 0, 1, 0], [], []>} : vector<8x64xf32>, vector<32x64xf32>, vector<8x32xf32> -> vector<8x32xf32>
    %228 = arith.addf %184, %227 : vector<8x32xf32>
    %229 = vector.broadcast %128 : vector<1x32xf32> to vector<8x32xf32>
    %230 = arith.addf %228, %229 : vector<8x32xf32>
    %231 = vector.extract_strided_slice %230 {offsets = [0, 0], sizes = [1, 32], strides = [1, 1]} : vector<8x32xf32> to vector<1x32xf32>
    %cst_90 = arith.constant dense<0.000000e+00> : vector<1xf32>
    %232 = vector.multi_reduction <add>, %231, %cst_90 [1] : vector<1x32xf32> to vector<1xf32>
    %233 = vector.shape_cast %232 : vector<1xf32> to vector<1x1xf32>
    %cst_91 = arith.constant 3.200000e+01 : f32
    %234 = vector.broadcast %cst_91 : f32 to vector<1x1xf32>
    %235 = arith.divf %233, %234 : vector<1x1xf32>
    %236 = vector.broadcast %235 : vector<1x1xf32> to vector<1x32xf32>
    %237 = arith.subf %231, %236 : vector<1x32xf32>
    %238 = arith.mulf %237, %237 : vector<1x32xf32>
    %cst_92 = arith.constant dense<0.000000e+00> : vector<1xf32>
    %239 = vector.multi_reduction <add>, %238, %cst_92 [1] : vector<1x32xf32> to vector<1xf32>
    %240 = vector.shape_cast %239 : vector<1xf32> to vector<1x1xf32>
    %cst_93 = arith.constant 3.200000e+01 : f32
    %241 = vector.broadcast %cst_93 : f32 to vector<1x1xf32>
    %242 = arith.divf %240, %241 : vector<1x1xf32>
    %243 = vector.broadcast %235 : vector<1x1xf32> to vector<1x32xf32>
    %244 = arith.subf %231, %243 : vector<1x32xf32>
    %cst_94 = arith.constant 9.99999996E-13 : f32
    %245 = vector.broadcast %cst_94 : f32 to vector<1x1xf32>
    %246 = arith.addf %242, %245 : vector<1x1xf32>
    %247 = math.rsqrt %246 : vector<1x1xf32>
    %248 = vector.broadcast %247 : vector<1x1xf32> to vector<1x32xf32>
    %249 = arith.mulf %244, %248 : vector<1x32xf32>
    %250 = arith.mulf %249, %6 : vector<1x32xf32>
    %251 = arith.addf %250, %7 : vector<1x32xf32>
    %cst_95 = arith.constant 0.000000e+00 : f32
    %252 = vector.broadcast %cst_95 : f32 to vector<1x32xf32>
    %253 = arith.cmpf oge, %251, %252 : vector<1x32xf32>
    %cst_96 = arith.constant 2.000000e-01 : f32
    %254 = vector.broadcast %cst_96 : f32 to vector<1x32xf32>
    %255 = arith.mulf %254, %251 : vector<1x32xf32>
    %256 = arith.select %253, %251, %255 : vector<1x32xi1>, vector<1x32xf32>
    %c0_97 = arith.constant 0 : index
    %c0_98 = arith.constant 0 : index
    %c0_99 = arith.constant 0 : index
    %257 = vector.load %arg9[%c0_97, %c0_98, %c0_99] : memref<1x1x32xf32, #tpu.memory_space<vmem>>, vector<1x1x32xf32>
    %258 = vector.shape_cast %257 : vector<1x1x32xf32> to vector<1x32xf32>
    %259 = vector.shape_cast %256 : vector<1x32xf32> to vector<1x1x32xf32>
    tpu.vector_store %arg9[%c0_97, %c0_98, %c0_99], %259 {strides = array<i32>} : memref<1x1x32xf32, #tpu.memory_space<vmem>>, vector<1x1x32xf32>,
    return
  }
  func.func @transform_0(%arg0: i32) -> (i32, i32, i32) {
    %c0_i32 = arith.constant 0 : i32
    %c0_i32_0 = arith.constant 0 : i32
    %c0_i32_1 = arith.constant 0 : i32
    return %arg0, %c0_i32, %c0_i32_0 : i32, i32, i32
  }
  func.func @transform_1(%arg0: i32) -> (i32, i32) {
    %c0_i32 = arith.constant 0 : i32
    %c0_i32_0 = arith.constant 0 : i32
    %c0_i32_1 = arith.constant 0 : i32
    return %c0_i32, %c0_i32_0 : i32, i32
  }
  func.func @transform_2(%arg0: i32) -> (i32, i32) {
    %c0_i32 = arith.constant 0 : i32
    %c0_i32_0 = arith.constant 0 : i32
    %c0_i32_1 = arith.constant 0 : i32
    return %c0_i32, %c0_i32_0 : i32, i32
  }
  func.func @transform_3(%arg0: i32) -> (i32, i32, i32, i32) {
    %c0_i32 = arith.constant 0 : i32
    %c0_i32_0 = arith.constant 0 : i32
    %c0_i32_1 = arith.constant 0 : i32
    %c0_i32_2 = arith.constant 0 : i32
    %c0_i32_3 = arith.constant 0 : i32
    return %c0_i32, %c0_i32_0, %c0_i32_1, %c0_i32_2 : i32, i32, i32, i32
  }
  func.func @transform_4(%arg0: i32) -> (i32, i32, i32, i32) {
    %c0_i32 = arith.constant 0 : i32
    %c0_i32_0 = arith.constant 0 : i32
    %c0_i32_1 = arith.constant 0 : i32
    %c0_i32_2 = arith.constant 0 : i32
    %c0_i32_3 = arith.constant 0 : i32
    return %c0_i32, %c0_i32_0, %c0_i32_1, %c0_i32_2 : i32, i32, i32, i32
  }
  func.func @transform_5(%arg0: i32) -> (i32, i32, i32, i32) {
    %c0_i32 = arith.constant 0 : i32
    %c0_i32_0 = arith.constant 0 : i32
    %c0_i32_1 = arith.constant 0 : i32
    %c0_i32_2 = arith.constant 0 : i32
    %c0_i32_3 = arith.constant 0 : i32
    return %c0_i32, %c0_i32_0, %c0_i32_1, %c0_i32_2 : i32, i32, i32, i32
  }
  func.func @transform_6(%arg0: i32) -> (i32, i32, i32) {
    %c0_i32 = arith.constant 0 : i32
    %c0_i32_0 = arith.constant 0 : i32
    %c0_i32_1 = arith.constant 0 : i32
    %c0_i32_2 = arith.constant 0 : i32
    return %c0_i32, %c0_i32_0, %c0_i32_1 : i32, i32, i32
  }
  func.func @transform_7(%arg0: i32) -> (i32, i32, i32) {
    %c0_i32 = arith.constant 0 : i32
    %c0_i32_0 = arith.constant 0 : i32
    %c0_i32_1 = arith.constant 0 : i32
    %c0_i32_2 = arith.constant 0 : i32
    return %c0_i32, %c0_i32_0, %c0_i32_1 : i32, i32, i32
  }
  func.func @transform_8(%arg0: i32) -> (i32, i32, i32) {
    %c0_i32 = arith.constant 0 : i32
    %c0_i32_0 = arith.constant 0 : i32
    %c0_i32_1 = arith.constant 0 : i32
    return %arg0, %c0_i32, %c0_i32_0 : i32, i32, i32
  }
}

</mosaic_0001>

<bundles_post_ra>
// kernel: vit_forward.1
= control target key start
LH: loop header
LB: loop body
LE: loop exit
PB: predicated region body
PF: predicated region fallthrough
CT: control target
= control target key end

     0   :  { %13 = vsyncpa [#allocation3], 0  ;;  %s4968_s0 = inlined_call_operand.vmem [shape: f32[2,8,192], index: 0, kind: input, shape index: {}]   ;;  %s4969_s1 = inlined_call_operand.vmem [shape: f32[192,32], index: 1, kind: input, shape index: {}]   ;;  %s4970_s2 = inlined_call_operand.vmem [shape: f32[16,32], index: 2, kind: input, shape index: {}]   ;;  %s4971_s3 = inlined_call_operand.vmem [shape: f32[2,4,32,24], index: 3, kind: input, shape index: {}]   ;;  %s4972_s4 = inlined_call_operand.vmem [shape: f32[2,4,1,24], index: 4, kind: input, shape index: {}]   ;;  %s4973_s5 = inlined_call_operand.vmem [shape: f32[2,4,8,32], index: 5, kind: input, shape index: {}]   ;;  %s4974_s6 = inlined_call_operand.vmem [shape: f32[2,32,128], index: 6, kind: input, shape index: {}]   ;;  %s4975_s7 = inlined_call_operand.vmem [shape: f32[2,8,128], index: 7, kind: input, shape index: {}]   ;;  %s4976_s8 = inlined_call_operand.hbm [shape: f32[2,1,32], index: 8, kind: output, shape index: {}]  }
   0x1   :  { %15 = vsyncpa [#allocation3 + $0x1], 0  ;;  %s4228_s27 = smov 0   ;;  %s4230_s28 = smov 0  }
   0x2   :  { %s4232_s29 = smov 0   ;;  %s4234_s30 = smov 0  }
   0x3 LB: > { %s4249_s9 = sadd.s32 4294967295, %s4175_s30   ;;  %s3564_s10 = sadd.s32 4294967294, %s4175_s30   ;;  %s4175_s30 = sphi %s4234_s30, %s4982_s30   ;;  %s4171_s29 = sphi %s4232_s29, %s4981_s29   ;;  %s4167_s28 = sphi %s4230_s28, %s4980_s28   ;;  %s4163_s27 = sphi %s4228_s27, %s4979_s27  }
   0x4   : > { %s4253_s11 = sadd.s32 1, %s4175_s30   ;;  %s201_s12 = sadd.s32 1, %s4171_s29 }
   0x5   : > { %s198_s13 = ssub.s32 %s4175_s30, %s4253_s11  ;;  %p211_p0 = scmp.ne.s32.totalorder %s4171_s29, %s4167_s28 }
   0x6   : > { %p199_p1 = scmp.eq.s32.totalorder %s198_s13, 0  ;;  %p212_p2 = scmp.eq.s32.totalorder %s4249_s9, 1 }
   0x7   : > { %p217_p3 = scmp.ne.s32.totalorder %s4167_s28, %s4163_s27  ;;  %p218_p4 = scmp.eq.s32.totalorder %s3564_s10, 1 }
   0x8   : > { %s4264_s14 = scalar_select %p199_p1, %s4171_s29, %s201_s12  }
   0x9   : > { %p4266_p5 = por %p212_p2, %p211_p0  ;;  %p4270_p6 = por %p218_p4, %p217_p3 }
   0xa   : > { %p3567_p7 = scmp.ge.s32.totalorder %s4175_s30, 1  ;;  %p265_p8 = scmp.lt.s32.totalorder %s4175_s30, 3 }
   0xc   : > { %p266_p9 = pnand %p3567_p7, %p265_p8 }
   0xd   : > { %p298_p10 = scmp.lt.s32.totalorder (!%p266_p9), %s4249_s9, 1  ;;  %s4179_s22 = smov (!%p266_p9), 120  }
   0xe   : > { %269 = sbr.rel (%p266_p9) target bundleno = 5129 (0x1409), region = 52  ;;  %s4180_s12 = smov (!%p266_p9), 112  }
   0xf   : > { %s3661_s20 = sshll.u32 (!%p266_p9), %s4249_s9, 4 }
  0x13   : > { %v320_v0 = vld [vmem:[%s4969_s1 + $0x78] sm:$0xff]  ;;  %v4177_v1 = vmov 0.0   ;;  %v319_v2 = vld [vmem:[%s4969_s1 + $0x70] sm:$0xff]  ;;  %s299_s21 = scalar_select %p298_p10, %s4249_s9, 1  ;;  %v318_v3 = vld [vmem:[%s4969_s1 + $0x68] sm:$0xff]  ;;  %vm329_vm0 = vcmask 523264   ;;  %v424_v44 = vlaneseq }
  0x14   : > { %333 = vmatprep.subr.mxu0 %v4177_v1  ;;  %3773 = vmatprep.subr.mxu1 %v4177_v1  ;;  %v317_v4 = vld [vmem:[%s4969_s1 + $0x60] sm:$0xff]  ;;  %v316_v5 = vld [vmem:[%s4969_s1 + $0x58] sm:$0xff]  ;;  %v315_v7 = vld [vmem:[%s4969_s1 + $0x50] sm:$0xff]  ;;  %vm409_vm1 = vcmask 261120   ;;  %vm4178_vm2 = vmmov 0   ;;  %vm768_vm3 = vcmask 64512  }
  0x15   : > { %334 = vmatpush1.msra.mxu0 %v320_v0  ;;  %s3664_s24 = sshll.u32 %s299_s21, 4  ;;  %v314_v8 = vld [vmem:[%s4969_s1 + $0x48] sm:$0xff]  ;;  %v313_v9 = vld [vmem:[%s4969_s1 + $0x40] sm:$0xff]  ;;  %v312_v10 = vld [vmem:[%s4969_s1 + $0x38] sm:$0xff]  ;;  %3781 = vmatprep.mubr.msk.f32.mxu1 %vm4178_vm2, %v4177_v1  ;;  %v4413_v45 = vshrl.u32 %v424_v44, 7  ;;  %vm3476_vm4 = vcmask 253952  }
  0x16   : > { %335 = vmatprep.subr.mxu0 %v4177_v1  ;;  %s4297_s13 = scalar_lea.vmem %s4968_s0, %s3664_s24  ;;  %v311_v11 = vld [vmem:[%s4969_s1 + $0x30] sm:$0xff]  ;;  %v310_v12 = vld [vmem:[%s4969_s1 + $0x28] sm:$0xff]  ;;  %v309_v13 = vld [vmem:[%s4969_s1 + $0x20] sm:$0xff]  ;;  %s4182_s9 = smov [#allocation2]  }
  0x17   : > { %336 = vmatpush1.msra.mxu0 %v319_v2  ;;  %v304_v6 = vld [vmem:[%s4297_s13 + $0x8] sm:$0xff]  ;;  %v308_v14 = vld [vmem:[%s4969_s1 + $0x18] sm:$0xff]  ;;  %v307_v15 = vld [vmem:[%s4969_s1 + $0x10] sm:$0xff]  ;;  %v426_v46 = vsub.s32 0, %v4413_v45  ;;  %v431_v48 = vsub.s32 1, %v4413_v45  ;;  %s4119_s10 = sshll.u32 %s4182_s9, 4  ;;  %s4120_s10 = int_to_ptr.vmem [resolvable:$false] %s4119_s10 }
  0x18   : > { %337 = vmatprep.subr.mxu0 %v4177_v1  ;;  %3570 = vmatprep.mubr.msk.f32.mxu0 %vm329_vm0, %v304_v6  ;;  %v306_v16 = vld [vmem:[%s4969_s1 + $0x8] sm:$0xff]  ;;  %v305_v17 = vld [vmem:[%s4969_s1] sm:$0xff]  ;;  %v328_v18 = vld [vmem:[%s4969_s1 + $0xb8] sm:$0xff]  ;;  %s4121_s17 = scalar_lea.vmem %s4120_s10, 32 }
  0x19   : > { %338 = vmatpush1.msra.mxu0 %v318_v3  ;;  %v327_v19 = vld [vmem:[%s4969_s1 + $0xb0] sm:$0xff]  ;;  %v326_v20 = vld [vmem:[%s4969_s1 + $0xa8] sm:$0xff]  ;;  %v325_v21 = vld [vmem:[%s4969_s1 + $0xa0] sm:$0xff] }
  0x1a   : > { %339 = vmatprep.subr.mxu0 %v4177_v1  ;;  %v324_v22 = vld [vmem:[%s4969_s1 + $0x98] sm:$0xff]  ;;  %v323_v23 = vld [vmem:[%s4969_s1 + $0x90] sm:$0xff]  ;;  %v322_v24 = vld [vmem:[%s4969_s1 + $0x88] sm:$0xff] }
  0x1b   : > { %340 = vmatpush1.msra.mxu0 %v317_v4  ;;  %v321_v25 = vld [vmem:[%s4969_s1 + $0x80] sm:$0xff]  ;;  %v437_v37 = vld [vmem:[%s4971_s3 + $0x18] sm:$0xff]  ;;  %v436_v38 = vld [vmem:[%s4971_s3 + $0x10] sm:$0xff] }
  0x1c   : > { %341 = vmatprep.subr.mxu0 %v4177_v1  ;;  %v303_v26 = vld [vmem:[%s4297_s13] sm:$0xff]  ;;  %3774 = vmatpush3.msra.mxu1 %v437_v37  ;;  %v435_v39 = vld [vmem:[%s4971_s3 + $0x8] sm:$0xff]  ;;  %v441_v55 = vld [vmem:[%s4971_s3 + $0x38] sm:$0xff]  ;;  %s4181_s13 = smov 64  }
  0x1d   : > { %342 = vmatpush1.msra.mxu0 %v316_v5  ;;  %v403_v27 = vld [vmem:[%s4970_s2] sm:$0xff]  ;;  %3775 = vmatprep.subr.mxu1 %v4177_v1  ;;  %v440_v56 = vld [vmem:[%s4971_s3 + $0x30] sm:$0xff]  ;;  %v439_v57 = vld [vmem:[%s4971_s3 + $0x28] sm:$0xff] }
  0x1e   : > { %343 = vmatprep.subr.mxu0 %v4177_v1  ;;  %3776 = vmatpush3.msra.mxu1 %v436_v38  ;;  %v434_v40 = vld [vmem:[%s4971_s3] sm:$0xff]  ;;  %v445_v59 = vld [vmem:[%s4971_s3 + $0x58] sm:$0xff]  ;;  %v444_v60 = vld [vmem:[%s4971_s3 + $0x50] sm:$0xff] }
  0x1f   : > { %344 = vmatpush1.msra.mxu0 %v315_v7  ;;  %3777 = vmatprep.subr.mxu1 %v4177_v1  ;;  %v4419_v47 = vld [vmem:[%s4975_s7] sm:$0xff]  ;;  %v443_v61 = vld [vmem:[%s4971_s3 + $0x48] sm:$0xff]  ;;  %v449_v63 = vld [vmem:[%s4971_s3 + $0x78] sm:$0xff] }
  0x20   : > { %345 = vmatprep.subr.mxu0 %v4177_v1  ;;  %3778 = vmatpush3.msra.mxu1 %v435_v39  ;;  %v427_v49 = vrot.slane %v4419_v47, %v426_v46  ;;  %v432_v52 = vrot.slane %v4419_v47, %v431_v48  ;;  %v438_v58 = vld [vmem:[%s4971_s3 + $0x20] sm:$0xff]  ;;  %v448_v0 = vld [vmem:[%s4971_s3 + $0x70] sm:$0xff]  ;;  %v447_v2 = vld [vmem:[%s4971_s3 + $0x68] sm:$0xff] }
  0x21   : > { %346 = vmatpush1.msra.mxu0 %v314_v8  ;;  %3779 = vmatprep.subr.mxu1 %v4177_v1  ;;  %v442_v62 = vld [vmem:[%s4971_s3 + $0x40] sm:$0xff] }
  0x22   : > { %347 = vmatprep.subr.mxu0 %v4177_v1  ;;  %3780 = vmatpush3.msra.mxu1 %v434_v40  ;;  %v446_v3 = vld [vmem:[%s4971_s3 + $0x60] sm:$0xff] }
  0x23   : > { %348 = vmatpush1.msra.mxu0 %v313_v9  ;;  %3784 = vmatprep.subr.mxu1 %v4177_v1  ;;  %v3572_v6 = vld [vmem:[%s4972_s4 + $0x1] ss:$0 sm:$0xff]  ;;  %v3571_v9 = vld [vmem:[%s4972_s4] ss:$0 sm:$0xff] }
  0x24   : > { %349 = vmatprep.subr.mxu0 %v4177_v1 }
  0x25   : > { %350 = vmatpush1.msra.mxu0 %v312_v10 }
  0x26   : > { %351 = vmatprep.subr.mxu0 %v4177_v1 }
  0x27   : > { %352 = vmatpush1.msra.mxu0 %v311_v11 }
  0x28   : > { %353 = vmatprep.subr.mxu0 %v4177_v1 }
  0x29   : > { %354 = vmatpush1.msra.mxu0 %v310_v12  ;;  %v3573_v12 = vld [vmem:[%s4972_s4 + $0x2] ss:$0 sm:$0xff] }
  0x2a   : > { %355 = vmatprep.subr.mxu0 %v4177_v1 }
  0x2b   : > { %356 = vmatpush1.msra.mxu0 %v309_v13 }
  0x2c   : > { %357 = vmatprep.subr.mxu0 %v4177_v1 }
  0x2d   : > { %358 = vmatpush1.msra.mxu0 %v308_v14 }
  0x2e   : > { %359 = vmatprep.subr.mxu0 %v4177_v1 }
  0x2f   : > { %360 = vmatpush1.msra.mxu0 %v307_v15 }
  0x30   : > { %361 = vmatprep.subr.mxu0 %v4177_v1 }
  0x31   : > { %362 = vmatpush1.msra.mxu0 %v306_v16  ;;  %v3574_v16 = vld [vmem:[%s4972_s4 + $0x3] ss:$0 sm:$0xff] }
  0x32   : > { %363 = vmatprep.subr.mxu0 %v4177_v1 }
  0x33   : > { %364 = vmatpush1.msra.mxu0 %v305_v17 }
  0x34   : > { %381 = vmatprep.subr.mxu0 %v4177_v1 }
  0x35   : > { %382 = vmatpush2.msra.mxu0 %v328_v18 }
  0x36   : > { %383 = vmatprep.subr.mxu0 %v4177_v1 }
  0x37   : > { %384 = vmatpush2.msra.mxu0 %v327_v19 }
  0x38   : > { %385 = vmatprep.subr.mxu0 %v4177_v1 }
  0x39   : > { %386 = vmatpush2.msra.mxu0 %v326_v20 }
  0x3a   : > { %387 = vmatprep.subr.mxu0 %v4177_v1 }
  0x3b   : > { %388 = vmatpush2.msra.mxu0 %v325_v21 }
  0x3c   : > { %389 = vmatprep.subr.mxu0 %v4177_v1 }
  0x3d   : > { %390 = vmatpush2.msra.mxu0 %v324_v22 }
  0x3e   : > { %391 = vmatprep.subr.mxu0 %v4177_v1 }
  0x3f   : > { %392 = vmatpush2.msra.mxu0 %v323_v23 }
  0x40   : > { %393 = vmatprep.subr.mxu0 %v4177_v1 }
  0x41   : > { %394 = vmatpush2.msra.mxu0 %v322_v24  ;;  %v4535_v24 = vld [vmem:[%s4970_s2 + $0xa] ss:$0 sm:$0xff] }
  0x42   : > { %395 = vmatprep.subr.mxu0 %v4177_v1 }
  0x43   : > { %396 = vmatpush2.msra.mxu0 %v321_v25 }
  0x44   : > { %398 = vmatmul.mubr.f32.vlgmr.msra.gmra.mxu0 %v303_v26  ;;  %3817 = vmatprep.subr.mxu0 %v4177_v1 }
  0x45   : > { %3819 = vmatprep.mubr.msk.f32.mxu0 %vm4178_vm2, %v4177_v1 }
 0x104   : > { %v399_v28 = vpop.f32.mrf.mxu0 }
 0x105   : > { %v4387_v29 = vadd.f32 %v403_v27, %v399_v28 }
 0x106   : > { %v401_v30 = vpop.f32.mrf.mxu0 }
 0x107   : > { %v410_v31 = vsel %vm409_vm1, %v4387_v29, 0.0 }
 0x108   : > { %411 = vadd.xlane.f32.xlu0 %v410_v31 }
 0x191   : > { %v412_v32 = vpop.xlane.xlu0 %411 }
 0x192   : > { %v414_v33 = vmul.f32 0.03125, %v412_v32 }
 0x194   : > { %v415_v34 = vsub.f32 %v4387_v29, %v414_v33 }
 0x196   : > { %v416_v35 = vmul.f32 %v415_v34, %v415_v34 }
 0x198   : > { %v417_v36 = vsel %vm409_vm1, %v416_v35, 0.0 }
 0x199   : > { %418 = vadd.xlane.f32.xlu0 %v417_v36 }
 0x222   : > { %v419_v41 = vpop.xlane.xlu0 %418 }
 0x223   : > { %v420_v42 = vmul.f32 0.03125, %v419_v41 }
 0x225   : > { %v421_v43 = vadd.f32 1e-12, %v420_v42 }
 0x227   : > { %4069 = vrsqrt.f32 %v421_v43 }
 0x234   : > { %v4070_v50 = vpop.eup %4069 }
 0x235   : > { %v423_v51 = vmul.f32 %v4070_v50, %v415_v34 }
 0x237   : > { %v428_v53 = vmul.f32 %v427_v49, %v423_v51 }
 0x239   : > { %v433_v54 = vadd.f32 %v432_v52, %v428_v53 }
 0x23b   : > { %3782 = vmatmul.mubr.msk.f32.vlgmr.msra.gmra.mxu1 %vm409_vm1, %v433_v54 }
 0x23c   : > { %3785 = vmatpush3.msra.mxu1 %v441_v55  ;;  %3792 = vmatprep.mubr.msk.f32.mxu1 %vm4178_vm2, %v4177_v1 }
 0x23d   : > { %3786 = vmatprep.subr.mxu1 %v4177_v1 }
 0x23e   : > { %3787 = vmatpush3.msra.mxu1 %v440_v56 }
 0x23f   : > { %3788 = vmatprep.subr.mxu1 %v4177_v1 }
 0x240   : > { %3789 = vmatpush3.msra.mxu1 %v439_v57 }
 0x241   : > { %3790 = vmatprep.subr.mxu1 %v4177_v1 }
 0x242   : > { %3791 = vmatpush3.msra.mxu1 %v438_v58 }
 0x243   : > { %3793 = vmatmul.mubr.msk.f32.vlgmr.msra.gmra.mxu1 %vm409_vm1, %v433_v54  ;;  %3795 = vmatprep.subr.mxu1 %v4177_v1 }
 0x244   : > { %3796 = vmatpush3.msra.mxu1 %v445_v59  ;;  %3803 = vmatprep.mubr.msk.f32.mxu1 %vm4178_vm2, %v4177_v1 }
 0x245   : > { %3797 = vmatprep.subr.mxu1 %v4177_v1 }
 0x246   : > { %3798 = vmatpush3.msra.mxu1 %v444_v60 }
 0x247   : > { %3799 = vmatprep.subr.mxu1 %v4177_v1 }
 0x248   : > { %3800 = vmatpush3.msra.mxu1 %v443_v61 }
 0x249   : > { %3801 = vmatprep.subr.mxu1 %v4177_v1 }
 0x24a   : > { %3802 = vmatpush3.msra.mxu1 %v442_v62 }
 0x24b   : > { %3804 = vmatmul.mubr.msk.f32.vlgmr.msra.gmra.mxu1 %vm409_vm1, %v433_v54  ;;  %3806 = vmatprep.subr.mxu1 %v4177_v1 }
 0x24c   : > { %3807 = vmatpush3.msra.mxu1 %v449_v63  ;;  %3814 = vmatprep.mubr.msk.f32.mxu1 %vm4178_vm2, %v4177_v1 }
 0x24d   : > { %3808 = vmatprep.subr.mxu1 %v4177_v1 }
 0x24e   : > { %3809 = vmatpush3.msra.mxu1 %v448_v0 }
 0x24f   : > { %3810 = vmatprep.subr.mxu1 %v4177_v1 }
 0x250   : > { %3811 = vmatpush3.msra.mxu1 %v447_v2 }
 0x251   : > { %3812 = vmatprep.subr.mxu1 %v4177_v1 }
 0x252   : > { %3813 = vmatpush3.msra.mxu1 %v446_v3 }
 0x253   : > { %3815 = vmatmul.mubr.msk.f32.vlgmr.msra.gmra.mxu1 %vm409_vm1, %v433_v54  ;;  %3822 = vmatprep.subr.mxu1 %v4177_v1 }
 0x254   : > { %3824 = vmatprep.mubr.msk.f32.mxu1 %vm4178_vm2, %v4177_v1 }
 0x2fb   : > { %v547_v4 = vpop.f32.mrf.mxu1 }
 0x2fc   : > { %v548_v11 = vadd.f32 %v3571_v9, %v547_v4 }
 0x2fd   : > { %v3783_v5 = vpop.f32.mrf.mxu1 }
 0x303   : > { %v617_v7 = vpop.f32.mrf.mxu1 }
 0x304   : > { %v618_v8 = vadd.f32 %v3572_v6, %v617_v7 }
 0x305   : > { %v3794_v10 = vpop.f32.mrf.mxu1 }
 0x306   : > { %844 = vrot.lane.b32.xlu1 %v618_v8, %s4179_s22 }
 0x30a   : > { %766 = vrot.lane.b32.xlu1 %v548_v11, %s4179_s22 }
 0x30b   : > { %v687_v13 = vpop.f32.mrf.mxu1 }
 0x30c   : > { %v4499_v14 = vadd.f32 %v3573_v12, %v687_v13 }
 0x30d   : > { %v3805_v15 = vpop.f32.mrf.mxu1 }
 0x30e   : > { %921 = vrot.lane.b32.xlu0 %v4499_v14, %s4179_s22 }
 0x313   : > { %v757_v17 = vpop.f32.mrf.mxu1 }
 0x314   : > { %v4506_v18 = vadd.f32 %v3574_v16, %v757_v17 }
 0x315   : > { %v3816_v19 = vpop.f32.mrf.mxu1 }
 0x316   : > { %998 = vrot.lane.b32.xlu1 %v4506_v18, %s4179_s22  ;;  %v1422_v19 = vld [vmem:[%s4973_s5] sm:$0xff] }
 0x378   : > { %v845_v20 = vpop.permute.xlu1 %844 }
 0x379   : > { %3823 = vmatpush3.xpose.msk.msra.mxu1 %vm768_vm3, %v845_v20  ;;  %v1423_v20 = vld [vmem:[%s4973_s5 + $0x8] sm:$0xff] }
 0x37a   : > { %3827 = vmatprep.subr.mxu1 %v4177_v1 }
 0x37c   : > { %3825 = vmatmul.mubr.msk.f32.vlgmr.msra.gmra.mxu1 %vm768_vm3, %v618_v8  ;;  %v767_v21 = vpop.permute.xlu1 %766 }
 0x37d   : > { %3818 = vmatpush3.xpose.msk.msra.mxu0 %vm768_vm3, %v767_v21  ;;  %3829 = vmatprep.mubr.msk.f32.mxu1 %vm4178_vm2, %v4177_v1  ;;  %v1424_v21 = vld [vmem:[%s4973_s5 + $0x10] sm:$0xff] }
 0x37e   : > { %3837 = vmatprep.subr.mxu0 %v4177_v1 }
 0x380   : > { %3820 = vmatmul.mubr.msk.f32.vlgmr.msra.gmra.mxu0 %vm768_vm3, %v548_v11  ;;  %v922_v22 = vpop.permute.xlu0 %921 }
 0x381   : > { %3828 = vmatpush3.xpose.msk.msra.mxu1 %vm768_vm3, %v922_v22  ;;  %3839 = vmatprep.mubr.msk.f32.mxu0 %vm4178_vm2, %v4177_v1 }
 0x382   : > { %3832 = vmatprep.subr.mxu1 %v4177_v1 }
 0x384   : > { %3830 = vmatmul.mubr.msk.f32.vlgmr.msra.gmra.mxu1 %vm768_vm3, %v4499_v14 }
 0x385   : > { %3834 = vmatprep.mubr.msk.f32.mxu1 %vm4178_vm2, %v4177_v1 }
 0x388   : > { %v999_v23 = vpop.permute.xlu1 %998 }
 0x389   : > { %3833 = vmatpush3.xpose.msk.msra.mxu1 %vm768_vm3, %v999_v23 }
 0x38a   : > { %3842 = vmatprep.subr.mxu1 %v4177_v1 }
 0x38c   : > { %3835 = vmatmul.mubr.msk.f32.vlgmr.msra.gmra.mxu1 %vm768_vm3, %v4506_v18 }
 0x38d   : > { %3844 = vmatprep.mubr.msk.f32.mxu1 %vm4178_vm2, %v4177_v1 }
 0x43c   : > { %v916_v25 = vpop.f32.mrf.mxu1 }
 0x43d   : > { %v917_v26 = vadd.f32 %v4535_v24, %v916_v25 }
 0x43e   : > { %v3826_v27 = vpop.f32.mrf.mxu1 }
 0x43f   : > { %v1077_v28 = vsel %vm768_vm3, %v917_v26, -inf }
 0x440   : > { %1078 = vmax.xlane.f32.xlu0 %v1077_v28  ;;  %v839_v30 = vpop.f32.mrf.mxu0 }
 0x441   : > { %v840_v31 = vadd.f32 %v4535_v24, %v839_v30 }
 0x442   : > { %v3821_v32 = vpop.f32.mrf.mxu0 }
 0x443   : > { %v1074_v33 = vsel %vm768_vm3, %v840_v31, -inf }
 0x444   : > { %v993_v34 = vpop.f32.mrf.mxu1  ;;  %1075 = vmax.xlane.f32.xlu1 %v1074_v33 }
 0x445   : > { %v994_v35 = vadd.f32 %v4535_v24, %v993_v34 }
 0x446   : > { %v3831_v36 = vpop.f32.mrf.mxu1 }
 0x447   : > { %v1080_v37 = vsel %vm768_vm3, %v994_v35, -inf }
 0x448   : > { %1081 = vmax.xlane.f32.xlu1 %v1080_v37 }
 0x44c   : > { %v1070_v38 = vpop.f32.mrf.mxu1 }
 0x44d   : > { %v1071_v39 = vadd.f32 %v4535_v24, %v1070_v38 }
 0x44e   : > { %v3836_v40 = vpop.f32.mrf.mxu1 }
 0x44f   : > { %v1083_v41 = vsel %vm768_vm3, %v1071_v39, -inf }
 0x450   : > { %1084 = vmax.xlane.f32.xlu1 %v1083_v41 }
 0x456   : > { %1118 = vrot.lane.b32.xlu0 %v548_v11, %s4180_s12 }
 0x461   : > { %1194 = vrot.lane.b32.xlu1 %v618_v8, %s4180_s12 }
 0x4c9   : > { %v1079_v42 = vpop.xlane.xlu0 %1078 }
 0x4ca   : > { %v1087_v43 = vsub.f32 %v917_v26, %v1079_v42  ;;  %v1425_v26 = vld [vmem:[%s4973_s5 + $0x18] sm:$0xff]  ;;  %v1728_v42 = vsub.s32 2, %v4413_v45 }
 0x4cc   : > { %v1092_v51 = vmul.f32 1.442695, %v1087_v43 }
 0x4cd   : > { %v1119_v44 = vpop.permute.xlu0 %1118  ;;  %v1076_v49 = vpop.xlane.xlu1 %1075 }
 0x4ce   : > { %v1086_v50 = vsub.f32 %v840_v31, %v1076_v49  ;;  %3838 = vmatpush3.msra.mxu0 %v1119_v44 }
 0x4cf   : > { %3847 = vmatprep.subr.mxu0 %v4177_v1 }
 0x4d0   : > { %v1090_v52 = vmul.f32 1.442695, %v1086_v50 }
 0x4d1   : > { %v1082_v53 = vpop.xlane.xlu1 %1081 }
 0x4d2   : > { %4071 = vpow2.f32 %v1090_v52  ;;  %v1088_v54 = vsub.f32 %v994_v35, %v1082_v53  ;;  %v1729_v53 = vrot.slane %v4419_v47, %v1728_v42 }
 0x4d3   : > { %4073 = vpow2.f32 %v1092_v51 }
 0x4d4   : > { %v1094_v55 = vmul.f32 1.442695, %v1088_v54 }
 0x4d6   : > { %4075 = vpow2.f32 %v1094_v55 }
 0x4d9   : > { %v1085_v56 = vpop.xlane.xlu1 %1084 }
 0x4da   : > { %v1089_v57 = vsub.f32 %v1071_v39, %v1085_v56 }
 0x4dc   : > { %v1096_v58 = vmul.f32 1.442695, %v1089_v57 }
 0x4dd   : > { %v1195_v59 = vpop.permute.xlu1 %1194 }
 0x4de   : > { %4077 = vpow2.f32 %v1096_v58  ;;  %3843 = vmatpush3.msra.mxu1 %v1195_v59 }
 0x4df   : > { %v4072_v60 = vpop.eup %4071  ;;  %3852 = vmatprep.subr.mxu1 %v4177_v1 }
 0x4e0   : > { %v1098_v61 = vsel %vm768_vm3, %v4072_v60, 0.0  ;;  %v4074_v62 = vpop.eup %4073 }
 0x4e1   : > { %1099 = vadd.xlane.f32.xlu1 %v1098_v61  ;;  %v1101_v0 = vsel %vm768_vm3, %v4074_v62, 0.0 }
 0x4e3   : > { %v4076_v63 = vpop.eup %4075 }
 0x4e4   : > { %v1104_v2 = vsel %vm768_vm3, %v4076_v63, 0.0 }
 0x4e5   : > { %1102 = vadd.xlane.f32.xlu1 %v1101_v0  ;;  %1105 = vadd.xlane.f32.xlu0 %v1104_v2  ;;  %v1754_v0 = vld [vmem:[%s4974_s6] sm:$0xff] }
 0x4eb   : > { %v4078_v3 = vpop.eup %4077 }
 0x4ec   : > { %v1107_v4 = vsel %vm768_vm3, %v4078_v3, 0.0 }
 0x4ed   : > { %1108 = vadd.xlane.f32.xlu1 %v1107_v4 }
 0x4fb   : > { %1346 = vrot.lane.b32.xlu0 %v4506_v18, %s4180_s12 }
 0x4fe   : > { %1270 = vrot.lane.b32.xlu1 %v4499_v14, %s4180_s12 }
 0x56a   : > { %v1100_v5 = vpop.xlane.xlu1 %1099 }
 0x56b   : > { %4079 = vrcp.f32 %v1100_v5  ;;  %v1746_v5 = vsub.s32 3, %v4413_v45 }
 0x56e   : > { %v1106_v6 = vpop.xlane.xlu0 %1105  ;;  %v1103_v7 = vpop.xlane.xlu1 %1102 }
 0x56f   : > { %4081 = vrcp.f32 %v1106_v6  ;;  %v1751_v6 = vsub.s32 4, %v4413_v45 }
 0x570   : > { %4083 = vrcp.f32 %v1103_v7  ;;  %v1747_v7 = vrot.slane %v4419_v47, %v1746_v5 }
 0x572   : > { %v1347_v16 = vpop.permute.xlu0 %1346 }
 0x576   : > { %v1109_v8 = vpop.xlane.xlu1 %1108 }
 0x577   : > { %4085 = vrcp.f32 %v1109_v8 }
 0x578   : > { %v4080_v9 = vpop.eup %4079 }
 0x579   : > { %v1114_v10 = vmul.f32 %v4080_v9, %v4072_v60 }
 0x57a   : > { %v1271_v11 = vpop.permute.xlu1 %1270 }
 0x57b   : > { %3840 = vmatmul.mubr.msk.f32.vlgmr.msra.gmra.mxu0 %vm768_vm3, %v1114_v10  ;;  %v1752_v10 = vrot.slane %v4419_v47, %v1751_v6 }
 0x57c   : > { %v4082_v12 = vpop.eup %4081  ;;  %3848 = vmatpush3.msra.mxu0 %v1271_v11  ;;  %3849 = vmatprep.mubr.msk.f32.mxu0 %vm4178_vm2, %v4177_v1 }
 0x57d   : > { %v4084_v13 = vpop.eup %4083  ;;  %v1116_v14 = vmul.f32 %v4082_v12, %v4076_v63  ;;  %3857 = vmatprep.subr.mxu0 %v4177_v1  ;;  %v1755_v63 = vld [vmem:[%s4974_s6 + $0x8] sm:$0xff] }
 0x57e   : > { %v1115_v15 = vmul.f32 %v4084_v13, %v4074_v62  ;;  %v1757_v62 = vld [vmem:[%s4974_s6 + $0x18] sm:$0xff] }
 0x57f   : > { %3850 = vmatmul.mubr.msk.f32.vlgmr.msra.gmra.mxu0 %vm768_vm3, %v1116_v14 }
 0x580   : > { %3845 = vmatmul.mubr.msk.f32.vlgmr.msra.gmra.mxu1 %vm768_vm3, %v1115_v15  ;;  %3859 = vmatprep.mubr.msk.f32.mxu0 %vm4178_vm2, %v4177_v1 }
 0x581   : > { %3853 = vmatpush3.msra.mxu1 %v1347_v16  ;;  %3854 = vmatprep.mubr.msk.f32.mxu1 %vm4178_vm2, %v4177_v1 }
 0x582   : > { %3862 = vmatprep.subr.mxu1 %v4177_v1  ;;  %3858 = vmatpush3.msra.mxu0 %v1422_v19 }
 0x583   : > { %3867 = vmatprep.subr.mxu0 %v4177_v1 }
 0x584   : > { %v4086_v17 = vpop.eup %4085 }
 0x585   : > { %v1117_v18 = vmul.f32 %v4086_v17, %v4078_v3  ;;  %v1760_v17 = vsub.s32 5, %v4413_v45 }
 0x587   : > { %3855 = vmatmul.mubr.msk.f32.vlgmr.msra.gmra.mxu1 %vm768_vm3, %v1117_v18  ;;  %v1761_v18 = vrot.slane %v4419_v47, %v1760_v17 }
 0x588   : > { %3864 = vmatprep.mubr.msk.f32.mxu1 %vm4178_vm2, %v4177_v1  ;;  %3863 = vmatpush3.msra.mxu1 %v1423_v20 }
 0x589   : > { %3872 = vmatprep.subr.mxu1 %v4177_v1 }
 0x63b   : > { %v1190_v22 = vpop.f32.mrf.mxu0 }
 0x63c   : > { %3860 = vmatmul.mubr.msk.f32.vlgmr.msra.gmra.mxu0 %vm768_vm3, %v1190_v22 }
 0x63d   : > { %v3841_v23 = vpop.f32.mrf.mxu0  ;;  %3868 = vmatpush3.msra.mxu0 %v1424_v21  ;;  %3869 = vmatprep.mubr.msk.f32.mxu0 %vm4178_vm2, %v4177_v1 }
 0x63e   : > { %3877 = vmatprep.subr.mxu0 %v4177_v1 }
 0x63f   : > { %v1342_v25 = vpop.f32.mrf.mxu0 }
 0x640   : > { %v1266_v27 = vpop.f32.mrf.mxu1  ;;  %3870 = vmatmul.mubr.msk.f32.vlgmr.msra.gmra.mxu0 %vm768_vm3, %v1342_v25 }
 0x641   : > { %3865 = vmatmul.mubr.msk.f32.vlgmr.msra.gmra.mxu1 %vm768_vm3, %v1266_v27  ;;  %v3851_v28 = vpop.f32.mrf.mxu0  ;;  %3885 = vmatprep.mubr.msk.f32.mxu0 %vm4178_vm2, %v4177_v1 }
 0x642   : > { %v3846_v30 = vpop.f32.mrf.mxu1  ;;  %3873 = vmatpush3.msra.mxu1 %v1425_v26  ;;  %3874 = vmatprep.mubr.msk.f32.mxu1 %vm4178_vm2, %v4177_v1 }
 0x643   : > { %3888 = vmatprep.subr.mxu1 %v4177_v1  ;;  %3878 = vmatpush3.msra.mxu0 %v1757_v62 }
 0x644   : > { %3879 = vmatprep.subr.mxu0 %v4177_v1 }
 0x647   : > { %v1418_v31 = vpop.f32.mrf.mxu1 }
 0x648   : > { %3875 = vmatmul.mubr.msk.f32.vlgmr.msra.gmra.mxu1 %vm768_vm3, %v1418_v31 }
 0x649   : > { %v3856_v32 = vpop.f32.mrf.mxu1  ;;  %3896 = vmatprep.mubr.msk.f32.mxu1 %vm4178_vm2, %v4177_v1 }
 0x6fc   : > { %v1495_v33 = vpop.f32.mrf.mxu0 }
 0x6fd   : > { %v1718_v39 = vsel %vm409_vm1, %v1495_v33, 0.0  ;;  %v1940_v33 = vsub.s32 6, %v4413_v45 }
 0x6fe   : > { %v3861_v34 = vpop.f32.mrf.mxu0 }
 0x6ff   : > { %v1941_v34 = vrot.slane %v4419_v47, %v1940_v33  ;;  %v3606_v47 = vld [vmem:[%s4971_s3 + $0x98] sm:$0xff] }
 0x700   : > { %v1641_v35 = vpop.f32.mrf.mxu0 }
 0x701   : > { %v1568_v36 = vpop.f32.mrf.mxu1  ;;  %v1721_v43 = vsel %vm409_vm1, %v1641_v35, 0.0 }
 0x702   : > { %v1719_v37 = vsel %vm409_vm1, %v1568_v36, 0.0  ;;  %v3871_v38 = vpop.f32.mrf.mxu0 }
 0x703   : > { %v3866_v40 = vpop.f32.mrf.mxu1  ;;  %v1720_v41 = vadd.f32 %v1719_v37, %v1718_v39 }
 0x705   : > { %v1722_v44 = vadd.f32 %v1721_v43, %v1720_v41 }
 0x708   : > { %v1714_v49 = vpop.f32.mrf.mxu1 }
 0x709   : > { %v1723_v50 = vsel %vm409_vm1, %v1714_v49, 0.0 }
 0x70a   : > { %v1724_v51 = vadd.f32 %v1723_v50, %v1722_v44  ;;  %v3876_v52 = vpop.f32.mrf.mxu1  ;;  %v3614_v50 = vld [vmem:[%s4971_s3 + $0xd8] sm:$0xff] }
 0x70b   : > { %v3613_v52 = vld [vmem:[%s4971_s3 + $0xd0] sm:$0xff] }
 0x70c   : > { %v1725_v54 = vadd.f32 %v1724_v51, %v4387_v29  ;;  %v1756_v29 = vld [vmem:[%s4974_s6 + $0x10] sm:$0xff] }
 0x70d   : > { %3880 = vmatpush3.msra.mxu0 %v1756_v29  ;;  %v3605_v51 = vld [vmem:[%s4971_s3 + $0x90] sm:$0xff] }
 0x70e   : > { %v4608_v55 = vadd.f32 %v1729_v53, %v1725_v54  ;;  %3881 = vmatprep.subr.mxu0 %v4177_v1  ;;  %v3604_v53 = vld [vmem:[%s4971_s3 + $0x88] sm:$0xff] }
 0x70f   : > { %3882 = vmatpush3.msra.mxu0 %v1755_v63  ;;  %v3612_v54 = vld [vmem:[%s4971_s3 + $0xc8] sm:$0xff] }
 0x710   : > { %v1731_v56 = vsel %vm409_vm1, %v4608_v55, 0.0  ;;  %3883 = vmatprep.subr.mxu0 %v4177_v1 }
 0x711   : > { %1732 = vadd.xlane.f32.xlu1 %v1731_v56  ;;  %3884 = vmatpush3.msra.mxu0 %v1754_v0  ;;  %v3611_v56 = vld [vmem:[%s4971_s3 + $0xc0] sm:$0xff] }
 0x712   : > { %3899 = vmatprep.subr.mxu0 %v4177_v1 }
 0x722   : > { %1852 = vrot.lane.b32.xlu1 %v1756_v29, %s4181_s13 }
 0x726   : > { %1850 = vrot.lane.b32.xlu1 %v1755_v63, %s4181_s13 }
 0x79a   : > { %v1733_v57 = vpop.xlane.xlu1 %1732 }
 0x79b   : > { %v1734_v58 = vmul.f32 0.03125, %v1733_v57 }
 0x79d   : > { %v1735_v59 = vsub.f32 %v4608_v55, %v1734_v58 }
 0x79e   : > { %v1853_v14 = vpop.permute.xlu1 %1852 }
 0x79f   : > { %v1736_v60 = vmul.f32 %v1735_v59, %v1735_v59 }
 0x7a1   : > { %v1737_v61 = vsel %vm409_vm1, %v1736_v60, 0.0  ;;  %v4706_v60 = vld [vmem:[%s4975_s7 + $0x8] sm:$0xff] }
 0x7a2   : > { %1738 = vadd.xlane.f32.xlu0 %v1737_v61  ;;  %v1851_v15 = vpop.permute.xlu1 %1850  ;;  %v1961_v61 = vrot.slane %v4706_v60, %v426_v46  ;;  %v1966_v29 = vrot.slane %v4706_v60, %v431_v48  ;;  %v3609_v46 = vld [vmem:[%s4971_s3 + $0xb0] sm:$0xff]  ;;  %v3608_v48 = vld [vmem:[%s4971_s3 + $0xa8] sm:$0xff] }
 0x7b8   : > { %1854 = vrot.lane.b32.xlu0 %v1757_v62, %s4181_s13 }
 0x7bc   : > { %1848 = vrot.lane.b32.xlu0 %v1754_v0, %s4181_s13 }
 0x82b   : > { %v1739_v2 = vpop.xlane.xlu0 %1738 }
 0x82c   : > { %v1740_v3 = vmul.f32 0.03125, %v1739_v2 }
 0x82e   : > { %v1741_v4 = vadd.f32 1e-12, %v1740_v3  ;;  %v3610_v3 = vld [vmem:[%s4971_s3 + $0xb8] sm:$0xff] }
 0x82f   : > { %v1855_v13 = vpop.permute.xlu0 %1854 }
 0x830   : > { %4087 = vrsqrt.f32 %v1741_v4  ;;  %3889 = vmatpush3.xpose.msk.msra.mxu1 %vm329_vm0, %v1855_v13  ;;  %v3607_v4 = vld [vmem:[%s4971_s3 + $0xa0] sm:$0xff] }
 0x831   : > { %3890 = vmatprep.subr.mxu1 %v4177_v1 }
 0x833   : > { %v1849_v16 = vpop.permute.xlu0 %1848 }
 0x834   : > { %3891 = vmatpush3.xpose.msk.msra.mxu1 %vm329_vm0, %v1853_v14 }
 0x835   : > { %3892 = vmatprep.subr.mxu1 %v4177_v1 }
 0x838   : > { %3893 = vmatpush3.xpose.msk.msra.mxu1 %vm329_vm0, %v1851_v15 }
 0x839   : > { %3894 = vmatprep.subr.mxu1 %v4177_v1 }
 0x83c   : > { %3895 = vmatpush3.xpose.msk.msra.mxu1 %vm329_vm0, %v1849_v16 }
 0x83d   : > { %v4088_v8 = vpop.eup %4087  ;;  %3921 = vmatprep.subr.mxu1 %v4177_v1 }
 0x83e   : > { %v1743_v9 = vmul.f32 %v4088_v8, %v1735_v59  ;;  %v3617_v8 = vld [vmem:[%s4971_s3 + $0xf0] sm:$0xff] }
 0x840   : > { %v1748_v11 = vmul.f32 %v1747_v7, %v1743_v9  ;;  %v3618_v7 = vld [vmem:[%s4971_s3 + $0xf8] sm:$0xff]  ;;  %v3616_v9 = vld [vmem:[%s4971_s3 + $0xe8] sm:$0xff] }
 0x842   : > { %v1753_v12 = vadd.f32 %v1752_v10, %v1748_v11  ;;  %v3615_v10 = vld [vmem:[%s4971_s3 + $0xe0] sm:$0xff] }
 0x843   : > { %v3623_v11 = vld [vmem:[%s4972_s4 + $0x4] ss:$0 sm:$0xff] }
 0x844   : > { %3886 = vmatmul.mubr.msk.f32.vlgmr.msra.gmra.mxu0 %vm409_vm1, %v1753_v12 }
 0x845   : > { %3907 = vmatprep.mubr.msk.f32.mxu0 %vm4178_vm2, %v4177_v1  ;;  %3900 = vmatpush3.msra.mxu0 %v3606_v47 }
 0x846   : > { %3901 = vmatprep.subr.mxu0 %v4177_v1 }
 0x847   : > { %3902 = vmatpush3.msra.mxu0 %v3605_v51 }
 0x848   : > { %3903 = vmatprep.subr.mxu0 %v4177_v1 }
 0x849   : > { %3904 = vmatpush3.msra.mxu0 %v3604_v53 }
 0x84a   : > { %3905 = vmatprep.subr.mxu0 %v4177_v1 }
 0x904   : > { %v1831_v19 = vpop.f32.mrf.mxu0 }
 0x905   : > { %v1832_v20 = vadd.f32 %v1831_v19, %v1761_v18  ;;  %v3624_v18 = vld [vmem:[%s4972_s4 + $0x5] ss:$0 sm:$0xff] }
 0x906   : > { %v3887_v21 = vpop.f32.mrf.mxu0 }
 0x907   : > { %v1835_v22 = vmul.f32 %v1832_v20, %v1832_v20  ;;  %v3625_v21 = vld [vmem:[%s4972_s4 + $0x6] ss:$0 sm:$0xff] }
 0x909   : > { %v1836_v23 = vmul.f32 %v1835_v22, %v1832_v20 }
 0x90b   : > { %v1837_v25 = vmul.f32 0.044715, %v1836_v23 }
 0x90d   : > { %v1838_v26 = vadd.f32 %v1837_v25, %v1832_v20  ;;  %v3626_v25 = vld [vmem:[%s4972_s4 + $0x7] ss:$0 sm:$0xff] }
 0x90f   : > { %v1839_v27 = vmul.f32 0.7978846, %v1838_v26 }
 0x911   : > { %4089 = vtanh.f32 %v1839_v27 }
 0x91e   : > { %v4090_v28 = vpop.eup %4089 }
 0x91f   : > { %v1841_v30 = vadd.f32 1.0, %v4090_v28 }
 0x921   : > { %v1842_v31 = vmul.f32 0.5, %v1841_v30 }
 0x923   : > { %v1843_v32 = vmul.f32 %v1842_v31, %v1832_v20 }
 0x925   : > { %3897 = vmatmul.mubr.msk.f32.vlgmr.msra.gmra.mxu1 %vm329_vm0, %v1843_v32 }
 0x926   : > { %3929 = vmatprep.mubr.msk.f32.mxu1 %vm4178_vm2, %v4177_v1  ;;  %3922 = vmatpush3.msra.mxu1 %v3614_v50 }
 0x927   : > { %3923 = vmatprep.subr.mxu1 %v4177_v1 }
 0x928   : > { %3924 = vmatpush3.msra.mxu1 %v3613_v52 }
 0x929   : > { %3925 = vmatprep.subr.mxu1 %v4177_v1 }
 0x92a   : > { %3926 = vmatpush3.msra.mxu1 %v3612_v54 }
 0x92b   : > { %3927 = vmatprep.subr.mxu1 %v4177_v1 }
 0x92c   : > { %3928 = vmatpush3.msra.mxu1 %v3611_v56 }
 0x92d   : > { %3943 = vmatprep.subr.mxu1 %v4177_v1 }
 0x9e5   : > { %v1933_v35 = vpop.f32.mrf.mxu1 }
 0x9e6   : > { %v1937_v36 = vadd.f32 %v1933_v35, %v4608_v55  ;;  %v3603_v55 = vld [vmem:[%s4971_s3 + $0x80] sm:$0xff] }
 0x9e7   : > { %v3898_v37 = vpop.f32.mrf.mxu1  ;;  %3906 = vmatpush3.msra.mxu0 %v3603_v55 }
 0x9e8   : > { %v4665_v38 = vadd.f32 %v1941_v34, %v1937_v36  ;;  %3910 = vmatprep.subr.mxu0 %v4177_v1 }
 0x9ea   : > { %v1945_v39 = vsel %vm409_vm1, %v4665_v38, 0.0 }
 0x9eb   : > { %1946 = vadd.xlane.f32.xlu1 %v1945_v39 }
 0xa74   : > { %v1947_v40 = vpop.xlane.xlu1 %1946 }
 0xa75   : > { %v1948_v41 = vmul.f32 0.03125, %v1947_v40 }
 0xa77   : > { %v1949_v43 = vsub.f32 %v4665_v38, %v1948_v41 }
 0xa79   : > { %v1950_v44 = vmul.f32 %v1949_v43, %v1949_v43 }
 0xa7b   : > { %v1951_v49 = vsel %vm409_vm1, %v1950_v44, 0.0 }
 0xa7c   : > { %1952 = vadd.xlane.f32.xlu0 %v1951_v49 }
 0xb05   : > { %v1953_v57 = vpop.xlane.xlu0 %1952 }
 0xb06   : > { %v1954_v58 = vmul.f32 0.03125, %v1953_v57 }
 0xb08   : > { %v1955_v59 = vadd.f32 1e-12, %v1954_v58 }
 0xb0a   : > { %4091 = vrsqrt.f32 %v1955_v59 }
 0xb17   : > { %v4092_v62 = vpop.eup %4091 }
 0xb18   : > { %v1957_v63 = vmul.f32 %v4092_v62, %v1949_v43 }
 0xb1a   : > { %v1962_v0 = vmul.f32 %v1961_v61, %v1957_v63 }
 0xb1c   : > { %v1967_v2 = vadd.f32 %v1966_v29, %v1962_v0 }
 0xb1e   : > { %3908 = vmatmul.mubr.msk.f32.vlgmr.msra.gmra.mxu0 %vm409_vm1, %v1967_v2  ;;  %3930 = vmatmul.mubr.msk.f32.vlgmr.msra.gmra.mxu1 %vm409_vm1, %v1967_v2 }
 0xb1f   : > { %3911 = vmatpush3.msra.mxu0 %v3610_v3  ;;  %3918 = vmatprep.mubr.msk.f32.mxu0 %vm4178_vm2, %v4177_v1 }
 0xb20   : > { %3912 = vmatprep.subr.mxu0 %v4177_v1  ;;  %3945 = vmatprep.mubr.msk.f32.mxu1 %vm4178_vm2, %v4177_v1 }
 0xb21   : > { %3913 = vmatpush3.msra.mxu0 %v3609_v46 }
 0xb22   : > { %3914 = vmatprep.subr.mxu0 %v4177_v1 }
 0xb23   : > { %3915 = vmatpush3.msra.mxu0 %v3608_v48 }
 0xb24   : > { %3916 = vmatprep.subr.mxu0 %v4177_v1 }
 0xb25   : > { %3917 = vmatpush3.msra.mxu0 %v3607_v4 }
 0xb26   : > { %3919 = vmatmul.mubr.msk.f32.vlgmr.msra.gmra.mxu0 %vm409_vm1, %v1967_v2  ;;  %3932 = vmatprep.subr.mxu0 %v4177_v1 }
 0xb27   : > { %3933 = vmatpush3.msra.mxu0 %v3618_v7  ;;  %3940 = vmatprep.mubr.msk.f32.mxu0 %vm4178_vm2, %v4177_v1 }
 0xb28   : > { %3934 = vmatprep.subr.mxu0 %v4177_v1 }
 0xb29   : > { %3935 = vmatpush3.msra.mxu0 %v3617_v8 }
 0xb2a   : > { %3936 = vmatprep.subr.mxu0 %v4177_v1 }
 0xb2b   : > { %3937 = vmatpush3.msra.mxu0 %v3616_v9 }
 0xb2c   : > { %3938 = vmatprep.subr.mxu0 %v4177_v1 }
 0xb2d   : > { %3939 = vmatpush3.msra.mxu0 %v3615_v10 }
 0xb2e   : > { %3941 = vmatmul.mubr.msk.f32.vlgmr.msra.gmra.mxu0 %vm409_vm1, %v1967_v2  ;;  %3953 = vmatprep.subr.mxu0 %v4177_v1 }
 0xb2f   : > { %3955 = vmatprep.mubr.msk.f32.mxu0 %vm4178_vm2, %v4177_v1 }
 0xbde   : > { %v2083_v12 = vpop.f32.mrf.mxu0  ;;  %v2223_v13 = vpop.f32.mrf.mxu1 }
 0xbdf   : > { %v2084_v14 = vadd.f32 %v3623_v11, %v2083_v12  ;;  %v4769_v23 = vadd.f32 %v3625_v21, %v2223_v13 }
 0xbe0   : > { %v3909_v15 = vpop.f32.mrf.mxu0  ;;  %v3931_v16 = vpop.f32.mrf.mxu1 }
 0xbe1   : > { %2298 = vrot.lane.b32.xlu0 %v2084_v14, %s4179_s22 }
 0xbe6   : > { %v2153_v19 = vpop.f32.mrf.mxu0 }
 0xbe7   : > { %v2154_v20 = vadd.f32 %v3624_v18, %v2153_v19 }
 0xbe8   : > { %v3920_v22 = vpop.f32.mrf.mxu0 }
 0xbe9   : > { %2375 = vrot.lane.b32.xlu1 %v2154_v20, %s4179_s22 }
 0xbed   : > { %2452 = vrot.lane.b32.xlu1 %v4769_v23, %s4179_s22 }
 0xbee   : > { %v2293_v26 = vpop.f32.mrf.mxu0 }
 0xbef   : > { %v4776_v27 = vadd.f32 %v3626_v25, %v2293_v26 }
 0xbf0   : > { %v3942_v28 = vpop.f32.mrf.mxu0 }
 0xbf1   : > { %2529 = vrot.lane.b32.xlu0 %v4776_v27, %s4179_s22 }
 0xc53   : > { %v2299_v30 = vpop.permute.xlu0 %2298 }
 0xc54   : > { %3944 = vmatpush3.xpose.msk.msra.mxu1 %vm768_vm3, %v2299_v30 }
 0xc55   : > { %3948 = vmatprep.subr.mxu1 %v4177_v1 }
 0xc57   : > { %3946 = vmatmul.mubr.msk.f32.vlgmr.msra.gmra.mxu1 %vm768_vm3, %v2084_v14 }
 0xc58   : > { %3950 = vmatprep.mubr.msk.f32.mxu1 %vm4178_vm2, %v4177_v1 }
 0xc5b   : > { %v2376_v31 = vpop.permute.xlu1 %2375 }
 0xc5c   : > { %3949 = vmatpush3.xpose.msk.msra.mxu1 %vm768_vm3, %v2376_v31  ;;  %v3643_v31 = vld [vmem:[%s4973_s5 + $0x20] sm:$0xff] }
 0xc5d   : > { %3958 = vmatprep.subr.mxu1 %v4177_v1 }
 0xc5f   : > { %3951 = vmatmul.mubr.msk.f32.vlgmr.msra.gmra.mxu1 %vm768_vm3, %v2154_v20  ;;  %v2453_v32 = vpop.permute.xlu1 %2452 }
 0xc60   : > { %3954 = vmatpush3.xpose.msk.msra.mxu0 %vm768_vm3, %v2453_v32  ;;  %3960 = vmatprep.mubr.msk.f32.mxu1 %vm4178_vm2, %v4177_v1  ;;  %v3644_v32 = vld [vmem:[%s4973_s5 + $0x28] sm:$0xff] }
 0xc61   : > { %3963 = vmatprep.subr.mxu0 %v4177_v1 }
 0xc63   : > { %3956 = vmatmul.mubr.msk.f32.vlgmr.msra.gmra.mxu0 %vm768_vm3, %v4769_v23  ;;  %v2530_v34 = vpop.permute.xlu0 %2529 }
 0xc64   : > { %3959 = vmatpush3.xpose.msk.msra.mxu1 %vm768_vm3, %v2530_v34  ;;  %3965 = vmatprep.mubr.msk.f32.mxu0 %vm4178_vm2, %v4177_v1  ;;  %v3645_v34 = vld [vmem:[%s4973_s5 + $0x30] sm:$0xff] }
 0xc65   : > { %3968 = vmatprep.subr.mxu1 %v4177_v1 }
 0xc67   : > { %3961 = vmatmul.mubr.msk.f32.vlgmr.msra.gmra.mxu1 %vm768_vm3, %v4776_v27 }
 0xc68   : > { %3970 = vmatprep.mubr.msk.f32.mxu1 %vm4178_vm2, %v4177_v1 }
 0xd17   : > { %v2370_v35 = vpop.f32.mrf.mxu1 }
 0xd18   : > { %v2371_v36 = vadd.f32 %v4535_v24, %v2370_v35 }
 0xd19   : > { %v3947_v37 = vpop.f32.mrf.mxu1 }
 0xd1a   : > { %v2605_v39 = vsel %vm768_vm3, %v2371_v36, -inf  ;;  %v3646_v37 = vld [vmem:[%s4973_s5 + $0x38] sm:$0xff] }
 0xd1b   : > { %2606 = vmax.xlane.f32.xlu1 %v2605_v39 }
 0xd1f   : > { %v2447_v40 = vpop.f32.mrf.mxu1 }
 0xd20   : > { %v2448_v41 = vadd.f32 %v4535_v24, %v2447_v40 }
 0xd21   : > { %v3952_v43 = vpop.f32.mrf.mxu1 }
 0xd22   : > { %v2608_v44 = vsel %vm768_vm3, %v2448_v41, -inf }
 0xd23   : > { %2609 = vmax.xlane.f32.xlu0 %v2608_v44  ;;  %v2524_v49 = vpop.f32.mrf.mxu0 }
 0xd24   : > { %v2525_v47 = vadd.f32 %v4535_v24, %v2524_v49 }
 0xd25   : > { %v3957_v50 = vpop.f32.mrf.mxu0 }
 0xd26   : > { %v2611_v51 = vsel %vm768_vm3, %v2525_v47, -inf }
 0xd27   : > { %v2601_v52 = vpop.f32.mrf.mxu1  ;;  %2612 = vmax.xlane.f32.xlu0 %v2611_v51 }
 0xd28   : > { %v2602_v53 = vadd.f32 %v4535_v24, %v2601_v52 }
 0xd29   : > { %v3962_v54 = vpop.f32.mrf.mxu1 }
 0xd2a   : > { %v2614_v55 = vsel %vm768_vm3, %v2602_v53, -inf }
 0xd2b   : > { %2615 = vmax.xlane.f32.xlu1 %v2614_v55 }
 0xd3c   : > { %2725 = vrot.lane.b32.xlu1 %v2154_v20, %s4180_s12 }
 0xd3d   : > { %2649 = vrot.lane.b32.xlu0 %v2084_v14, %s4180_s12 }
 0xda4   : > { %v2607_v56 = vpop.xlane.xlu1 %2606 }
 0xda5   : > { %v2617_v57 = vsub.f32 %v2371_v36, %v2607_v56 }
 0xda7   : > { %v2621_v58 = vmul.f32 1.442695, %v2617_v57 }
 0xda9   : > { %4093 = vpow2.f32 %v2621_v58 }
 0xdac   : > { %v2610_v59 = vpop.xlane.xlu0 %2609 }
 0xdad   : > { %v2618_v61 = vsub.f32 %v2448_v41, %v2610_v59 }
 0xdaf   : > { %v2623_v62 = vmul.f32 1.442695, %v2618_v61 }
 0xdb0   : > { %v2613_v29 = vpop.xlane.xlu0 %2612 }
 0xdb1   : > { %4095 = vpow2.f32 %v2623_v62  ;;  %v2619_v63 = vsub.f32 %v2525_v47, %v2613_v29 }
 0xdb3   : > { %v2625_v0 = vmul.f32 1.442695, %v2619_v63 }
 0xdb4   : > { %v2616_v24 = vpop.xlane.xlu1 %2615  ;;  %v2650_v2 = vpop.permute.xlu0 %2649 }
 0xdb5   : > { %4097 = vpow2.f32 %v2625_v0  ;;  %v2620_v3 = vsub.f32 %v2602_v53, %v2616_v24  ;;  %3964 = vmatpush3.msra.mxu0 %v2650_v2  ;;  %v3261_v0 = vrot.slane %v4706_v60, %v1728_v42  ;;  %v3654_v42 = vld [vmem:[%s4974_s6 + $0x38] sm:$0xff] }
 0xdb6   : > { %v4094_v46 = vpop.eup %4093  ;;  %3973 = vmatprep.subr.mxu0 %v4177_v1 }
 0xdb7   : > { %v2627_v48 = vmul.f32 1.442695, %v2620_v3  ;;  %v2629_v4 = vsel %vm768_vm3, %v4094_v46, 0.0 }
 0xdb8   : > { %v2726_v7 = vpop.permute.xlu1 %2725  ;;  %2630 = vadd.xlane.f32.xlu0 %v2629_v4 }
 0xdb9   : > { %4099 = vpow2.f32 %v2627_v48  ;;  %3969 = vmatpush3.msra.mxu1 %v2726_v7 }
 0xdba   : > { %3978 = vmatprep.subr.mxu1 %v4177_v1 }
 0xdbe   : > { %v4096_v8 = vpop.eup %4095 }
 0xdbf   : > { %v2632_v9 = vsel %vm768_vm3, %v4096_v8, 0.0 }
 0xdc0   : > { %2633 = vadd.xlane.f32.xlu1 %v2632_v9  ;;  %v3652_v9 = vld [vmem:[%s4974_s6 + $0x28] sm:$0xff] }
 0xdc2   : > { %v4098_v10 = vpop.eup %4097 }
 0xdc3   : > { %v2635_v11 = vsel %vm768_vm3, %v4098_v10, 0.0 }
 0xdc4   : > { %2636 = vadd.xlane.f32.xlu0 %v2635_v11 }
 0xdc6   : > { %v4100_v12 = vpop.eup %4099 }
 0xdc7   : > { %v2638_v13 = vsel %vm768_vm3, %v4100_v12, 0.0 }
 0xdc8   : > { %2639 = vadd.xlane.f32.xlu1 %v2638_v13 }
 0xdd9   : > { %2801 = vrot.lane.b32.xlu1 %v4769_v23, %s4180_s12 }
 0xdda   : > { %2877 = vrot.lane.b32.xlu0 %v4776_v27, %s4180_s12  ;;  %s4932_s12 = scalar_lea.hbm %s4976_s8, %s3661_s20 }
 0xe41   : > { %v2631_v14 = vpop.xlane.xlu0 %2630 }
 0xe42   : > { %4101 = vrcp.f32 %v2631_v14  ;;  %v3279_v14 = vrot.slane %v4706_v60, %v1746_v5 }
 0xe49   : > { %v2634_v15 = vpop.xlane.xlu1 %2633 }
 0xe4a   : > { %4103 = vrcp.f32 %v2634_v15 }
 0xe4d   : > { %v2637_v16 = vpop.xlane.xlu0 %2636 }
 0xe4e   : > { %4105 = vrcp.f32 %v2637_v16 }
 0xe4f   : > { %v4102_v18 = vpop.eup %4101 }
 0xe50   : > { %v2645_v19 = vmul.f32 %v4102_v18, %v4094_v46  ;;  %v3284_v18 = vrot.slane %v4706_v60, %v1751_v6 }
 0xe51   : > { %v2640_v20 = vpop.xlane.xlu1 %2639  ;;  %v2878_v25 = vpop.permute.xlu0 %2877 }
 0xe52   : > { %4107 = vrcp.f32 %v2640_v20  ;;  %3966 = vmatmul.mubr.msk.f32.vlgmr.msra.gmra.mxu0 %vm768_vm3, %v2645_v19 }
 0xe53   : > { %3975 = vmatprep.mubr.msk.f32.mxu0 %vm4178_vm2, %v4177_v1 }
 0xe55   : > { %v2802_v21 = vpop.permute.xlu1 %2801 }
 0xe56   : > { %3974 = vmatpush3.msra.mxu0 %v2802_v21 }
 0xe57   : > { %v4104_v22 = vpop.eup %4103  ;;  %3983 = vmatprep.subr.mxu0 %v4177_v1 }
 0xe58   : > { %v2646_v23 = vmul.f32 %v4104_v22, %v4096_v8 }
 0xe5a   : > { %3971 = vmatmul.mubr.msk.f32.vlgmr.msra.gmra.mxu1 %vm768_vm3, %v2646_v23  ;;  %v3294_v23 = vrot.slane %v4706_v60, %v1760_v17 }
 0xe5b   : > { %v4106_v26 = vpop.eup %4105  ;;  %3979 = vmatpush3.msra.mxu1 %v2878_v25  ;;  %3980 = vmatprep.mubr.msk.f32.mxu1 %vm4178_vm2, %v4177_v1 }
 0xe5c   : > { %v2647_v27 = vmul.f32 %v4106_v26, %v4098_v10  ;;  %3988 = vmatprep.subr.mxu1 %v4177_v1  ;;  %v3651_v10 = vld [vmem:[%s4974_s6 + $0x20] sm:$0xff] }
 0xe5e   : > { %3976 = vmatmul.mubr.msk.f32.vlgmr.msra.gmra.mxu0 %vm768_vm3, %v2647_v27 }
 0xe5f   : > { %v4108_v28 = vpop.eup %4107  ;;  %3985 = vmatprep.mubr.msk.f32.mxu0 %vm4178_vm2, %v4177_v1  ;;  %3984 = vmatpush3.msra.mxu0 %v3643_v31 }
 0xe60   : > { %v2648_v30 = vmul.f32 %v4108_v28, %v4100_v12  ;;  %3993 = vmatprep.subr.mxu0 %v4177_v1 }
 0xe62   : > { %3981 = vmatmul.mubr.msk.f32.vlgmr.msra.gmra.mxu1 %vm768_vm3, %v2648_v30 }
 0xe63   : > { %3990 = vmatprep.mubr.msk.f32.mxu1 %vm4178_vm2, %v4177_v1  ;;  %3989 = vmatpush3.msra.mxu1 %v3644_v32 }
 0xe64   : > { %3998 = vmatprep.subr.mxu1 %v4177_v1 }
 0xf12   : > { %v2721_v35 = vpop.f32.mrf.mxu0 }
 0xf13   : > { %3986 = vmatmul.mubr.msk.f32.vlgmr.msra.gmra.mxu0 %vm768_vm3, %v2721_v35 }
 0xf14   : > { %v3967_v36 = vpop.f32.mrf.mxu0  ;;  %3994 = vmatpush3.msra.mxu0 %v3645_v34  ;;  %3995 = vmatprep.mubr.msk.f32.mxu0 %vm4178_vm2, %v4177_v1 }
 0xf15   : > { %4003 = vmatprep.subr.mxu0 %v4177_v1 }
 0xf1a   : > { %v2797_v39 = vpop.f32.mrf.mxu1 }
 0xf1b   : > { %3991 = vmatmul.mubr.msk.f32.vlgmr.msra.gmra.mxu1 %vm768_vm3, %v2797_v39  ;;  %v3474_v39 = vrot.slane %v4706_v60, %v1940_v33 }
 0xf1c   : > { %v3972_v40 = vpop.f32.mrf.mxu1  ;;  %3999 = vmatpush3.msra.mxu1 %v3646_v37  ;;  %4000 = vmatprep.mubr.msk.f32.mxu1 %vm4178_vm2, %v4177_v1 }
 0xf1d   : > { %4014 = vmatprep.subr.mxu1 %v4177_v1 }
 0xf1e   : > { %v2873_v41 = vpop.f32.mrf.mxu0 }
 0xf1f   : > { %3996 = vmatmul.mubr.msk.f32.vlgmr.msra.gmra.mxu0 %vm768_vm3, %v2873_v41 }
 0xf20   : > { %v3977_v43 = vpop.f32.mrf.mxu0  ;;  %4011 = vmatprep.mubr.msk.f32.mxu0 %vm4178_vm2, %v4177_v1  ;;  %4004 = vmatpush3.msra.mxu0 %v3654_v42 }
 0xf21   : > { %4005 = vmatprep.subr.mxu0 %v4177_v1 }
 0xf22   : > { %v2949_v44 = vpop.f32.mrf.mxu1 }
 0xf23   : > { %4001 = vmatmul.mubr.msk.f32.vlgmr.msra.gmra.mxu1 %vm768_vm3, %v2949_v44 }
 0xf24   : > { %v3982_v49 = vpop.f32.mrf.mxu1  ;;  %4022 = vmatprep.mubr.msk.f32.mxu1 %vm4178_vm2, %v4177_v1 }
 0xfd3   : > { %v3027_v47 = vpop.f32.mrf.mxu0 }
 0xfd4   : > { %v3250_v55 = vsel %vm409_vm1, %v3027_v47, 0.0 }
 0xfd5   : > { %v3987_v50 = vpop.f32.mrf.mxu0 }
 0xfdb   : > { %v3100_v51 = vpop.f32.mrf.mxu1 }
 0xfdc   : > { %v3251_v53 = vsel %vm409_vm1, %v3100_v51, 0.0 }
 0xfdd   : > { %v3992_v52 = vpop.f32.mrf.mxu1  ;;  %v3252_v57 = vadd.f32 %v3251_v53, %v3250_v55 }
 0xfdf   : > { %v3173_v54 = vpop.f32.mrf.mxu0 }
 0xfe0   : > { %v3253_v56 = vsel %vm409_vm1, %v3173_v54, 0.0  ;;  %v405_v54 = vld [vmem:[%s4970_s2 + $0x8] sm:$0x1] }
 0xfe1   : > { %v3997_v58 = vpop.f32.mrf.mxu0  ;;  %v3254_v59 = vadd.f32 %v3253_v56, %v3252_v57  ;;  %v406_v56 = vld [vmem:[%s4970_s2 + $0x9] sm:$0x1] }
 0xfe3   : > { %v3246_v61 = vpop.f32.mrf.mxu1 }
 0xfe4   : > { %v3255_v62 = vsel %vm409_vm1, %v3246_v61, 0.0 }
 0xfe5   : > { %v3256_v29 = vadd.f32 %v3255_v62, %v3254_v59  ;;  %v4002_v63 = vpop.f32.mrf.mxu1 }
 0xfe7   : > { %v3257_v24 = vadd.f32 %v3256_v29, %v4665_v38  ;;  %v3653_v38 = vld [vmem:[%s4974_s6 + $0x30] sm:$0xff] }
 0xfe8   : > { %4006 = vmatpush3.msra.mxu0 %v3653_v38 }
 0xfe9   : > { %v4872_v2 = vadd.f32 %v3261_v0, %v3257_v24  ;;  %4007 = vmatprep.subr.mxu0 %v4177_v1 }
 0xfea   : > { %4008 = vmatpush3.msra.mxu0 %v3652_v9 }
 0xfeb   : > { %v3263_v3 = vsel %vm409_vm1, %v4872_v2, 0.0  ;;  %4009 = vmatprep.subr.mxu0 %v4177_v1 }
 0xfec   : > { %3264 = vadd.xlane.f32.xlu1 %v3263_v3  ;;  %4010 = vmatpush3.msra.mxu0 %v3651_v10 }
 0xffd   : > { %3385 = vrot.lane.b32.xlu1 %v3653_v38, %s4181_s13 }
0x1001   : > { %3383 = vrot.lane.b32.xlu1 %v3652_v9, %s4181_s13 }
0x1075   : > { %v3265_v46 = vpop.xlane.xlu1 %3264 }
0x1076   : > { %v3266_v48 = vmul.f32 0.03125, %v3265_v46 }
0x1078   : > { %v3267_v4 = vsub.f32 %v4872_v2, %v3266_v48 }
0x1079   : > { %v3386_v22 = vpop.permute.xlu1 %3385 }
0x107a   : > { %v3268_v7 = vmul.f32 %v3267_v4, %v3267_v4 }
0x107c   : > { %v3269_v8 = vsel %vm409_vm1, %v3268_v7, 0.0 }
0x107d   : > { %3270 = vadd.xlane.f32.xlu0 %v3269_v8  ;;  %v3384_v5 = vpop.permute.xlu1 %3383 }
0x1093   : > { %3387 = vrot.lane.b32.xlu0 %v3654_v42, %s4181_s13 }
0x1097   : > { %3381 = vrot.lane.b32.xlu0 %v3651_v10, %s4181_s13  ;;  %s296_s13 = sand.u32 1, %s4167_s28  }
0x1098   : > { %s297_s21 = scalar_lea.vmem [#allocation2], %s296_s13  ;;  %s3497_s25 = scalar_lea.sflag [#allocation3], %s296_s13 }
0x1099   : > { %s3509_s23 = sshll.u32 %s297_s21, 4  ;;  %s3510_s23 = int_to_ptr.vmem [resolvable:$true] %s3509_s23 }
0x109a   : > { %s4115_s26 = scalar_lea.vmem %s3510_s23, 16  ;;  %p4122_p0 = scmp.lt.s32.totalorder %s3510_s23, %s4120_s10 }
0x109b   : > { %p4116_p11 = scmp.ne.s32.totalorder %s3510_s23, %s4115_s26  ;;  %p4123_p1 = scmp.lt.s32.totalorder %s4121_s17, %s4115_s26 }
0x109d   : > { %p4117_p12 = pnand %p4116_p11, %p4266_p5  ;;  %p4124_p2 = por %p4123_p1, %p4122_p0 }
0x109f   : > { %p4118_p13 = pneg %p4117_p12 }
0x10a1   : > { %p4125_p3 = pnand %p4124_p2, %p4118_p13 }
0x1106   : > { %v3271_v11 = vpop.xlane.xlu0 %3270 }
0x1107   : > { %v3272_v12 = vmul.f32 0.03125, %v3271_v11 }
0x1109   : > { %v3273_v13 = vadd.f32 1e-12, %v3272_v12 }
0x110a   : > { %v3388_v21 = vpop.permute.xlu0 %3387 }
0x110b   : > { %4109 = vrsqrt.f32 %v3273_v13  ;;  %4015 = vmatpush3.xpose.msk.msra.mxu1 %vm329_vm0, %v3388_v21 }
0x110c   : > { %4016 = vmatprep.subr.mxu1 %v4177_v1 }
0x110e   : > { %v3382_v6 = vpop.permute.xlu0 %3381 }
0x110f   : > { %4017 = vmatpush3.xpose.msk.msra.mxu1 %vm329_vm0, %v3386_v22 }
0x1110   : > { %4018 = vmatprep.subr.mxu1 %v4177_v1 }
0x1113   : > { %4019 = vmatpush3.xpose.msk.msra.mxu1 %vm329_vm0, %v3384_v5 }
0x1114   : > { %4020 = vmatprep.subr.mxu1 %v4177_v1 }
0x1117   : > { %4021 = vmatpush3.xpose.msk.msra.mxu1 %vm329_vm0, %v3382_v6 }
0x1118   : > { %v4110_v15 = vpop.eup %4109 }
0x1119   : > { %v3275_v16 = vmul.f32 %v4110_v15, %v3267_v4 }
0x111b   : > { %v3280_v19 = vmul.f32 %v3279_v14, %v3275_v16 }
0x111d   : > { %v3285_v20 = vadd.f32 %v3284_v18, %v3280_v19 }
0x111f   : > { %4012 = vmatmul.mubr.msk.f32.vlgmr.msra.gmra.mxu0 %vm409_vm1, %v3285_v20 }
0x11df   : > { %v3364_v25 = vpop.f32.mrf.mxu0 }
0x11e0   : > { %v3365_v26 = vadd.f32 %v3364_v25, %v3294_v23 }
0x11e1   : > { %v4013_v27 = vpop.f32.mrf.mxu0 }
0x11e2   : > { %v3368_v28 = vmul.f32 %v3365_v26, %v3365_v26 }
0x11e4   : > { %v3369_v30 = vmul.f32 %v3368_v28, %v3365_v26 }
0x11e6   : > { %v3370_v31 = vmul.f32 0.044715, %v3369_v30 }
0x11e8   : > { %v3371_v32 = vadd.f32 %v3370_v31, %v3365_v26 }
0x11ea   : > { %v3372_v34 = vmul.f32 0.7978846, %v3371_v32 }
0x11ec   : > { %4111 = vtanh.f32 %v3372_v34 }
0x11f9   : > { %v4112_v35 = vpop.eup %4111 }
0x11fa   : > { %v3374_v36 = vadd.f32 1.0, %v4112_v35 }
0x11fc   : > { %v3375_v37 = vmul.f32 0.5, %v3374_v36 }
0x11fe   : > { %v3376_v1 = vmul.f32 %v3375_v37, %v3365_v26 }
0x1200   : > { %4023 = vmatmul.mubr.msk.f32.vlgmr.msra.gmra.mxu1 %vm329_vm0, %v3376_v1 }
0x12c0   : > { %v3466_v17 = vpop.f32.mrf.mxu1 }
0x12c1   : > { %v3470_v40 = vadd.f32 %v3466_v17, %v4872_v2 }
0x12c2   : > { %v4024_v41 = vpop.f32.mrf.mxu1 }
0x12c3   : > { %v3475_v43 = vadd.f32 %v3474_v39, %v3470_v40 }
0x12c5   : > { %v3477_v44 = vsel %vm3476_vm4, %v3475_v43, 0.0 }
0x12c6   : > { %3478 = vadd.xlane.f32.xlu1 %v3477_v44 }
0x134f   : > { %v3479_v49 = vpop.xlane.xlu1 %3478 }
0x1350   : > { %v3480_v47 = vmul.f32 0.03125, %v3479_v49 }
0x1352   : > { %v3481_v50 = vsub.f32 %v3475_v43, %v3480_v47 }
0x1354   : > { %v3482_v51 = vmul.f32 %v3481_v50, %v3481_v50 }
0x1356   : > { %v3483_v52 = vsel %vm3476_vm4, %v3482_v51, 0.0 }
0x1357   : > { %3484 = vadd.xlane.f32.xlu0 %v3483_v52 }
0x13e0   : > { %v3485_v45 = vpop.xlane.xlu0 %3484 }
0x13e1   : > { %v3486_v33 = vmul.f32 0.03125, %v3485_v45 }
0x13e3   : > { %v3487_v60 = vadd.f32 1e-12, %v3486_v33 }
0x13e5   : > { %4113 = vrsqrt.f32 %v3487_v60 }
0x13f2   : > { %v4114_v53 = vpop.eup %4113 }
0x13f3   : > { %v3489_v55 = vmul.f32 %v4114_v53, %v3481_v50 }
0x13f5   : > { %v3490_v57 = vmul.f32 %v3489_v55, %v405_v54 }
0x13f7   : > { %v3491_v58 = vadd.f32 %v3490_v57, %v406_v56 }
0x13f9   : > { %vm3492_vm5 = vcmp.ge.f32.partialorder %v3491_v58, 0.0  ;;  %v3493_v59 = vmul.f32 0.2, %v3491_v58 }
0x13fb   : > { %v3494_v61 = vsel %vm3492_vm5, %v3491_v58, %v3493_v59 }
0x13fc   : > { %3495 = vst.msk [vmem:[%s297_s21] sm:$0x1] %vm3476_vm4, %v3494_v61 }
0x13fd   : > { %4128 = shalt.err (!%p4125_p3)
}
0x13fe   : > { %s4129_s18 = scalar_lea.hbm %s4932_s12, 16  ;;  %s4133_s20 = scalar_lea.hbm %s4976_s8, 32 }
0x13ff   : > { %p4130_p4 = scmp.ne.s32.totalorder %s4932_s12, %s4129_s18  ;;  %p4134_p9 = scmp.lt.s32.totalorder %s4932_s12, %s4976_s8 }
0x1400   : > { %p4135_p10 = scmp.lt.s32.totalorder %s4133_s20, %s4129_s18 }
0x1401   : > { %p4131_p7 = pnand %p4130_p4, %p4266_p5 }
0x1402   : > { %p4136_p11 = por %p4135_p10, %p4134_p9 }
0x1403   : > { %p4132_p8 = pneg %p4131_p7 }
0x1405   : > { %p4137_p12 = pnand %p4136_p11, %p4132_p8 }
0x1407   : > { %4140 = shalt.err (!%p4137_p12)
}
0x1408   : > { %4025 = dma.vmem_to_hbm [thread:$0]  (%p4266_p5), %s3510_s23, 16, %s4932_s12, %s3497_s25  }
0x1409 PF: > { %p4031_p13 = scmp.ge.s32.totalorder %s4175_s30, 2  ;;  %s3521_s22 = sand.u32 1, %s4163_s27  }
0x140a   : > { %s3522_s26 = scalar_lea.sflag [#allocation3], %s3521_s22 }
0x140b   : > { %p4028_p0 = pnand %p4031_p13, %p4270_p6 }
0x140d   : > { %p4029_p1 = pneg %p4028_p0 }
0x140f   : > { %4158 = dma.done.wait (%p4029_p1), %s3522_s26, 16  }
0x1410   : > { %4160 = vsyncadd (%p4029_p1), %s3522_s26, 4294967280  ;;  %p18_p2 = scmp.ge.s32.totalorder %s4253_s11, 4   ;;  %s4979_s27 = smov %s4167_s28 }
0x1411   : > { %s4980_s28 = smov %s4171_s29  ;;  %s4981_s29 = smov %s4264_s14 }
0x1412   : > { %s4982_s30 = smov %s4253_s11  ;;  %20 = sbr.rel (!%p18_p2) target bundleno = 3 (0x3), region = 92 }
0x1417   :  { %3526 = vsyncpa [#allocation3], 1 }
0x1418   :  { %3528 = vsyncpa [#allocation3 + $0x1], 1 }

</bundles_post_ra>
